<compile_context>
chip_gen: v6e
topology: v6e:2x2x1
jax: 0.10.0
libtpu: 0.0.40
codegen_flags: <defaults>
</compile_context>

<pallas_src>
import functools

import jax
import jax.numpy as jnp
from jax import lax
from jax.experimental import pallas as pl
from jax.experimental.pallas import tpu as pltpu


def block_kernel(x_ref,
                 ln1_w_ref, ln1_b_ref,
                 wqkv_ref, wproj_ref, bproj_ref,
                 ln2_w_ref, ln2_b_ref,
                 w1_ref, b1_ref, w2_ref, b2_ref,
                 o_ref,
                 *, n_head, seq_len, batch_per_program):
    x = x_ref[...].astype(jnp.float32)            # (R, C), R = batch_per_program * T
    R, C = x.shape
    T = seq_len
    H = n_head
    hs = C // H
    eps = 1e-5
    scale = C ** (-0.5)                           # PyTorch Head scales by n_embd**-0.5

    def layer_norm(v, w, b):
        mu = jnp.mean(v, axis=-1, keepdims=True)
        var = jnp.mean((v - mu) ** 2, axis=-1, keepdims=True)   # biased, like torch LN
        return (v - mu) * lax.rsqrt(var + eps) * w + b

    # ---------------- attention sublayer: x = x + proj(concat_heads(attn(LN1(x)))) ----------
    xn = layer_norm(x, ln1_w_ref[...], ln1_b_ref[...])

    # fused Q/K/V projection: one lane-dense (R, C) @ (C, 3C) bf16 matmul
    qkv = jnp.dot(xn.astype(jnp.bfloat16), wqkv_ref[...],
                  preferred_element_type=jnp.float32)           # (R, 3C) f32
    q_all = (qkv[:, :C] * scale).astype(jnp.bfloat16)           # scale folded into q
    k_all = qkv[:, C:2 * C].astype(jnp.bfloat16)
    v_all = qkv[:, 2 * C:].astype(jnp.bfloat16)

    row = lax.broadcasted_iota(jnp.int32, (T, T), 0)
    col = lax.broadcasted_iota(jnp.int32, (T, T), 1)
    causal = col <= row
    neg_big = jnp.float32(-1e30)                  # finite, safe if T ever gets padded

    att_rows = []
    for b in range(batch_per_program):            # static, tiny (1 or 2)
        r0 = b * T
        q_b = q_all[r0:r0 + T]                    # (T, C) bf16
        k_b = k_all[r0:r0 + T]
        v_b = v_all[r0:r0 + T]
        head_outs = []
        for h in range(H):                        # static lane slices per head
            c0 = h * hs
            qh = q_b[:, c0:c0 + hs]
            kh = k_b[:, c0:c0 + hs]
            vh = v_b[:, c0:c0 + hs]
            s = lax.dot_general(qh, kh, (((1,), (1,)), ((), ())),
                                preferred_element_type=jnp.float32)   # (T, T) f32
            s = jnp.where(causal, s, neg_big)
            s = s - jnp.max(s, axis=-1, keepdims=True)
            p = jnp.exp(s)
            p = p * pl.reciprocal(jnp.sum(p, axis=-1, keepdims=True), approx=True)
            # attention dropout: identity (eval mode)
            head_outs.append(jnp.dot(p.astype(jnp.bfloat16), vh,
                                     preferred_element_type=jnp.float32))  # (T, hs)
        att_rows.append(jnp.concatenate(head_outs, axis=-1))     # (T, C)
    att = att_rows[0] if batch_per_program == 1 else jnp.concatenate(att_rows, axis=0)

    # single full-K output projection instead of per-head partial-K matmuls
    sa = jnp.dot(att.astype(jnp.bfloat16), wproj_ref[...],
                 preferred_element_type=jnp.float32) + bproj_ref[...]
    # projection dropout: identity (eval mode)
    x = x + sa

    # ---------------- feed-forward sublayer: x = x + W2(relu(W1(LN2(x)))) --------------------
    xn2 = layer_norm(x, ln2_w_ref[...], ln2_b_ref[...])
    h1 = jnp.dot(xn2.astype(jnp.bfloat16), w1_ref[...],
                 preferred_element_type=jnp.float32) + b1_ref[...]
    h1 = jnp.maximum(h1, 0.0)
    ff = jnp.dot(h1.astype(jnp.bfloat16), w2_ref[...],
                 preferred_element_type=jnp.float32) + b2_ref[...]
    # ffwd dropout: identity (eval mode)
    x = x + ff

    o_ref[...] = x.astype(o_ref.dtype)            # one store of the whole slab


def _num_batch_shards(B):
    # v7x has 2 TensorCores per chip -> shard the batch axis across them.
    # v5e / v6e have 1 TC -> a grid is just a serial loop, so collapse it.
    try:
        kind = jax.devices()[0].device_kind.lower()
        if "v7" in kind and B % 2 == 0:
            return 2
    except Exception:
        pass
    return 1


def transformer_block(x, params, *, n_head):
    (ln1_w, ln1_b, wq, wk, wv, wproj, bproj,
     ln2_w, ln2_b, w1, b1, w2, b2) = params

    B, T, C = x.shape
    H = n_head
    hs = C // H

    # ---- wrapper-side layout plumbing (not compute hoisting) ----
    # Restack per-head (H, C, hs) weights into one lane-dense (C, 3C) matrix so
    # the kernel does a single Q/K/V matmul; store matmul weights as bf16.
    def fuse(w):                                   # (H, C, hs) -> (C, H*hs)
        return jnp.transpose(w, (1, 0, 2)).reshape(C, C)

    wqkv = jnp.concatenate([fuse(wq), fuse(wk), fuse(wv)], axis=1).astype(jnp.bfloat16)
    wproj_bf = wproj.astype(jnp.bfloat16)
    w1_bf = w1.astype(jnp.bfloat16)
    w2_bf = w2.astype(jnp.bfloat16)

    x2d = x.reshape(B * T, C)                      # flat (B*T, C) activation slab

    n_shards = _num_batch_shards(B)
    bs = B // n_shards                             # batch elements per program
    rows = bs * T

    def full(shape):
        return pl.BlockSpec(shape, lambda i, _n=len(shape): (0,) * _n)

    in_specs = [
        pl.BlockSpec((rows, C), lambda i: (i, 0)),   # x slab
        full((1, C)), full((1, C)),                  # ln1 w, b      (f32)
        full((C, 3 * C)),                            # Wqkv          (bf16)
        full((C, C)), full((1, C)),                  # Wproj, bproj
        full((1, C)), full((1, C)),                  # ln2 w, b
        full((C, 4 * C)), full((1, 4 * C)),          # ffwd W1, b1
        full((4 * C, C)), full((1, C)),              # ffwd W2, b2
    ]
    out_spec = pl.BlockSpec((rows, C), lambda i: (i, 0))

    kernel = functools.partial(block_kernel, n_head=H, seq_len=T,
                               batch_per_program=bs)
    out2d = pl.pallas_call(
        kernel,
        out_shape=jax.ShapeDtypeStruct((B * T, C), x.dtype),
        grid=(n_shards,),
        in_specs=in_specs,
        out_specs=out_spec,
        compiler_params=pltpu.CompilerParams(dimension_semantics=("parallel",)),
    )(x2d, ln1_w, ln1_b, wqkv, wproj_bf, bproj,
      ln2_w, ln2_b, w1_bf, b1, w2_bf, b2)

    return out2d.reshape(B, T, C)


if __name__ == "__main__":
    # config: n_embd=32, n_head=4, block_size=8, dropout_percent irrelevant (eval)
    B, T, C, H = 2, 8, 32, 4
    hs = C // H

    key = jax.random.PRNGKey(0)
    keys = jax.random.split(key, 12)
    s = 0.05
    x = jax.random.normal(keys[0], (B, T, C), jnp.float32)

    params = (
        jnp.ones((1, C), jnp.float32),                                     # ln1 weight
        jnp.zeros((1, C), jnp.float32),                                    # ln1 bias
        (jax.random.normal(keys[1], (H, C, hs)) * s).astype(jnp.float32),  # Wq (per head)
        (jax.random.normal(keys[2], (H, C, hs)) * s).astype(jnp.float32),  # Wk
        (jax.random.normal(keys[3], (H, C, hs)) * s).astype(jnp.float32),  # Wv
        (jax.random.normal(keys[4], (C, C)) * s).astype(jnp.float32),      # Wproj
        (jax.random.normal(keys[5], (1, C)) * s).astype(jnp.float32),      # bproj
        jnp.ones((1, C), jnp.float32),                                     # ln2 weight
        jnp.zeros((1, C), jnp.float32),                                    # ln2 bias
        (jax.random.normal(keys[6], (C, 4 * C)) * s).astype(jnp.float32),  # W1
        (jax.random.normal(keys[7], (1, 4 * C)) * s).astype(jnp.float32),  # b1
        (jax.random.normal(keys[8], (4 * C, C)) * s).astype(jnp.float32),  # W2
        (jax.random.normal(keys[9], (1, C)) * s).astype(jnp.float32),      # b2
    )

    out = transformer_block(x, params, n_head=H)
    jax.block_until_ready(out)
    assert out.shape == (B, T, C)
    assert bool(jnp.all(jnp.isfinite(out)))
    print("KERNEL_OK")
</pallas_src>

<mosaic_0001>
module attributes {stable_mosaic.version = 11 : i64} {
  func.func @block_kernel(%arg0: i32, %arg1: memref<16x32xf32, #tpu.memory_space<vmem>>, %arg2: memref<1x32xf32, #tpu.memory_space<vmem>>, %arg3: memref<1x32xf32, #tpu.memory_space<vmem>>, %arg4: memref<32x96xbf16, #tpu.memory_space<vmem>>, %arg5: memref<32x32xbf16, #tpu.memory_space<vmem>>, %arg6: memref<1x32xf32, #tpu.memory_space<vmem>>, %arg7: memref<1x32xf32, #tpu.memory_space<vmem>>, %arg8: memref<1x32xf32, #tpu.memory_space<vmem>>, %arg9: memref<32x128xbf16, #tpu.memory_space<vmem>>, %arg10: memref<1x128xf32, #tpu.memory_space<vmem>>, %arg11: memref<128x32xbf16, #tpu.memory_space<vmem>>, %arg12: memref<1x32xf32, #tpu.memory_space<vmem>>, %arg13: memref<16x32xf32, #tpu.memory_space<vmem>>) attributes {dimension_semantics = [#tpu.dimension_semantics<parallel>], iteration_bounds = array<i64: 1>, scalar_prefetch = 0 : i64, scratch_operands = 0 : i64, tpu.core_type = #tpu.core_type<tc>, window_params = [{transform_indices = @transform_0, window_bounds = array<i64: 16, 32>}, {pipeline_mode = #tpu.pipeline_mode<synchronous>, transform_indices = @transform_1, window_bounds = array<i64: 1, 32>}, {pipeline_mode = #tpu.pipeline_mode<synchronous>, transform_indices = @transform_2, window_bounds = array<i64: 1, 32>}, {pipeline_mode = #tpu.pipeline_mode<synchronous>, transform_indices = @transform_3, window_bounds = array<i64: 32, 96>}, {pipeline_mode = #tpu.pipeline_mode<synchronous>, transform_indices = @transform_4, window_bounds = array<i64: 32, 32>}, {pipeline_mode = #tpu.pipeline_mode<synchronous>, transform_indices = @transform_5, window_bounds = array<i64: 1, 32>}, {pipeline_mode = #tpu.pipeline_mode<synchronous>, transform_indices = @transform_6, window_bounds = array<i64: 1, 32>}, {pipeline_mode = #tpu.pipeline_mode<synchronous>, transform_indices = @transform_7, window_bounds = array<i64: 1, 32>}, {pipeline_mode = #tpu.pipeline_mode<synchronous>, transform_indices = @transform_8, window_bounds = array<i64: 32, 128>}, {pipeline_mode = #tpu.pipeline_mode<synchronous>, transform_indices = @transform_9, window_bounds = array<i64: 1, 128>}, {pipeline_mode = #tpu.pipeline_mode<synchronous>, transform_indices = @transform_10, window_bounds = array<i64: 128, 32>}, {pipeline_mode = #tpu.pipeline_mode<synchronous>, transform_indices = @transform_11, window_bounds = array<i64: 1, 32>}, {transform_indices = @transform_12, window_bounds = array<i64: 16, 32>}]} {
    %c0 = arith.constant 0 : index
    %c0_0 = arith.constant 0 : index
    %0 = vector.load %arg1[%c0, %c0_0] : memref<16x32xf32, #tpu.memory_space<vmem>>, vector<16x32xf32>
    %c0_1 = arith.constant 0 : index
    %c0_2 = arith.constant 0 : index
    %1 = vector.load %arg2[%c0_1, %c0_2] : memref<1x32xf32, #tpu.memory_space<vmem>>, vector<1x32xf32>
    %c0_3 = arith.constant 0 : index
    %c0_4 = arith.constant 0 : index
    %2 = vector.load %arg3[%c0_3, %c0_4] : memref<1x32xf32, #tpu.memory_space<vmem>>, vector<1x32xf32>
    %cst = arith.constant dense<0.000000e+00> : vector<16xf32>
    %3 = vector.multi_reduction <add>, %0, %cst [1] : vector<16x32xf32> to vector<16xf32>
    %4 = vector.shape_cast %3 : vector<16xf32> to vector<16x1xf32>
    %cst_5 = arith.constant 3.200000e+01 : f32
    %5 = vector.broadcast %cst_5 : f32 to vector<16x1xf32>
    %6 = arith.divf %4, %5 : vector<16x1xf32>
    %7 = vector.broadcast %6 : vector<16x1xf32> to vector<16x32xf32>
    %8 = arith.subf %0, %7 : vector<16x32xf32>
    %9 = arith.mulf %8, %8 : vector<16x32xf32>
    %cst_6 = arith.constant dense<0.000000e+00> : vector<16xf32>
    %10 = vector.multi_reduction <add>, %9, %cst_6 [1] : vector<16x32xf32> to vector<16xf32>
    %11 = vector.shape_cast %10 : vector<16xf32> to vector<16x1xf32>
    %cst_7 = arith.constant 3.200000e+01 : f32
    %12 = vector.broadcast %cst_7 : f32 to vector<16x1xf32>
    %13 = arith.divf %11, %12 : vector<16x1xf32>
    %14 = vector.broadcast %6 : vector<16x1xf32> to vector<16x32xf32>
    %15 = arith.subf %0, %14 : vector<16x32xf32>
    %cst_8 = arith.constant 9.99999974E-6 : f32
    %16 = vector.broadcast %cst_8 : f32 to vector<16x1xf32>
    %17 = arith.addf %13, %16 : vector<16x1xf32>
    %18 = math.rsqrt %17 : vector<16x1xf32>
    %19 = vector.broadcast %18 : vector<16x1xf32> to vector<16x32xf32>
    %20 = arith.mulf %15, %19 : vector<16x32xf32>
    %21 = vector.broadcast %1 : vector<1x32xf32> to vector<16x32xf32>
    %22 = arith.mulf %20, %21 : vector<16x32xf32>
    %23 = vector.broadcast %2 : vector<1x32xf32> to vector<16x32xf32>
    %24 = arith.addf %22, %23 : vector<16x32xf32>
    %25 = arith.truncf %24 : vector<16x32xf32> to vector<16x32xbf16>
    %c0_9 = arith.constant 0 : index
    %c0_10 = arith.constant 0 : index
    %26 = vector.load %arg4[%c0_9, %c0_10] : memref<32x96xbf16, #tpu.memory_space<vmem>>, vector<32x96xbf16>
    %cst_11 = arith.constant dense<0.000000e+00> : vector<16x96xf32>
    %27 = tpu.matmul %25, %26, %cst_11 {dimension_numbers = #tpu.dot_dimension_numbers<[1], [0], [0], [1], [0, 0, 1, 1], [], []>} : vector<16x32xbf16>, vector<32x96xbf16>, vector<16x96xf32> -> vector<16x96xf32>
    %28 = vector.extract_strided_slice %27 {offsets = [0, 0], sizes = [16, 32], strides = [1, 1]} : vector<16x96xf32> to vector<16x32xf32>
    %cst_12 = arith.constant 0.176776692 : f32
    %29 = vector.broadcast %cst_12 : f32 to vector<16x32xf32>
    %30 = arith.mulf %28, %29 : vector<16x32xf32>
    %31 = arith.truncf %30 : vector<16x32xf32> to vector<16x32xbf16>
    %32 = vector.extract_strided_slice %27 {offsets = [0, 32], sizes = [16, 32], strides = [1, 1]} : vector<16x96xf32> to vector<16x32xf32>
    %33 = arith.truncf %32 : vector<16x32xf32> to vector<16x32xbf16>
    %34 = vector.extract_strided_slice %27 {offsets = [0, 64], sizes = [16, 32], strides = [1, 1]} : vector<16x96xf32> to vector<16x32xf32>
    %35 = arith.truncf %34 : vector<16x32xf32> to vector<16x32xbf16>
    %36 = tpu.iota {dimensions = array<i32: 0>} : vector<8x8xi32>
    %37 = tpu.iota {dimensions = array<i32: 1>} : vector<8x8xi32>
    %38 = arith.cmpi sle, %37, %36 : vector<8x8xi32>
    %39 = vector.extract_strided_slice %31 {offsets = [0, 0], sizes = [8, 32], strides = [1, 1]} : vector<16x32xbf16> to vector<8x32xbf16>
    %40 = vector.extract_strided_slice %33 {offsets = [0, 0], sizes = [8, 32], strides = [1, 1]} : vector<16x32xbf16> to vector<8x32xbf16>
    %41 = vector.extract_strided_slice %35 {offsets = [0, 0], sizes = [8, 32], strides = [1, 1]} : vector<16x32xbf16> to vector<8x32xbf16>
    %42 = vector.extract_strided_slice %39 {offsets = [0, 0], sizes = [8, 8], strides = [1, 1]} : vector<8x32xbf16> to vector<8x8xbf16>
    %43 = vector.extract_strided_slice %40 {offsets = [0, 0], sizes = [8, 8], strides = [1, 1]} : vector<8x32xbf16> to vector<8x8xbf16>
    %44 = vector.extract_strided_slice %41 {offsets = [0, 0], sizes = [8, 8], strides = [1, 1]} : vector<8x32xbf16> to vector<8x8xbf16>
    %cst_13 = arith.constant dense<0.000000e+00> : vector<8x8xf32>
    %45 = tpu.matmul %42, %43, %cst_13 {dimension_numbers = #tpu.dot_dimension_numbers<[1], [1], [0], [0], [0, 0, 1, 0], [], []>} : vector<8x8xbf16>, vector<8x8xbf16>, vector<8x8xf32> -> vector<8x8xf32>
    %cst_14 = arith.constant -1.000000e+30 : f32
    %46 = vector.broadcast %cst_14 : f32 to vector<8x8xf32>
    %47 = arith.select %38, %45, %46 : vector<8x8xi1>, vector<8x8xf32>
    %cst_15 = arith.constant dense<0xFF800000> : vector<8xf32>
    %48 = vector.multi_reduction <maximumf>, %47, %cst_15 [1] : vector<8x8xf32> to vector<8xf32>
    %49 = vector.shape_cast %48 : vector<8xf32> to vector<8x1xf32>
    %50 = vector.broadcast %49 : vector<8x1xf32> to vector<8x8xf32>
    %51 = arith.subf %47, %50 : vector<8x8xf32>
    %52 = math.exp %51 : vector<8x8xf32>
    %cst_16 = arith.constant dense<0.000000e+00> : vector<8xf32>
    %53 = vector.multi_reduction <add>, %52, %cst_16 [1] : vector<8x8xf32> to vector<8xf32>
    %54 = vector.shape_cast %53 : vector<8xf32> to vector<8x1xf32>
    %55 = tpu.reciprocal %54 {approx = true} : vector<8x1xf32> -> vector<8x1xf32>
    %56 = vector.broadcast %55 : vector<8x1xf32> to vector<8x8xf32>
    %57 = arith.mulf %52, %56 : vector<8x8xf32>
    %58 = arith.truncf %57 : vector<8x8xf32> to vector<8x8xbf16>
    %cst_17 = arith.constant dense<0.000000e+00> : vector<8x8xf32>
    %59 = tpu.matmul %58, %44, %cst_17 {dimension_numbers = #tpu.dot_dimension_numbers<[1], [0], [0], [1], [0, 0, 1, 1], [], []>} : vector<8x8xbf16>, vector<8x8xbf16>, vector<8x8xf32> -> vector<8x8xf32>
    %60 = vector.extract_strided_slice %39 {offsets = [0, 8], sizes = [8, 8], strides = [1, 1]} : vector<8x32xbf16> to vector<8x8xbf16>
    %61 = vector.extract_strided_slice %40 {offsets = [0, 8], sizes = [8, 8], strides = [1, 1]} : vector<8x32xbf16> to vector<8x8xbf16>
    %62 = vector.extract_strided_slice %41 {offsets = [0, 8], sizes = [8, 8], strides = [1, 1]} : vector<8x32xbf16> to vector<8x8xbf16>
    %cst_18 = arith.constant dense<0.000000e+00> : vector<8x8xf32>
    %63 = tpu.matmul %60, %61, %cst_18 {dimension_numbers = #tpu.dot_dimension_numbers<[1], [1], [0], [0], [0, 0, 1, 0], [], []>} : vector<8x8xbf16>, vector<8x8xbf16>, vector<8x8xf32> -> vector<8x8xf32>
    %cst_19 = arith.constant -1.000000e+30 : f32
    %64 = vector.broadcast %cst_19 : f32 to vector<8x8xf32>
    %65 = arith.select %38, %63, %64 : vector<8x8xi1>, vector<8x8xf32>
    %cst_20 = arith.constant dense<0xFF800000> : vector<8xf32>
    %66 = vector.multi_reduction <maximumf>, %65, %cst_20 [1] : vector<8x8xf32> to vector<8xf32>
    %67 = vector.shape_cast %66 : vector<8xf32> to vector<8x1xf32>
    %68 = vector.broadcast %67 : vector<8x1xf32> to vector<8x8xf32>
    %69 = arith.subf %65, %68 : vector<8x8xf32>
    %70 = math.exp %69 : vector<8x8xf32>
    %cst_21 = arith.constant dense<0.000000e+00> : vector<8xf32>
    %71 = vector.multi_reduction <add>, %70, %cst_21 [1] : vector<8x8xf32> to vector<8xf32>
    %72 = vector.shape_cast %71 : vector<8xf32> to vector<8x1xf32>
    %73 = tpu.reciprocal %72 {approx = true} : vector<8x1xf32> -> vector<8x1xf32>
    %74 = vector.broadcast %73 : vector<8x1xf32> to vector<8x8xf32>
    %75 = arith.mulf %70, %74 : vector<8x8xf32>
    %76 = arith.truncf %75 : vector<8x8xf32> to vector<8x8xbf16>
    %cst_22 = arith.constant dense<0.000000e+00> : vector<8x8xf32>
    %77 = tpu.matmul %76, %62, %cst_22 {dimension_numbers = #tpu.dot_dimension_numbers<[1], [0], [0], [1], [0, 0, 1, 1], [], []>} : vector<8x8xbf16>, vector<8x8xbf16>, vector<8x8xf32> -> vector<8x8xf32>
    %78 = vector.extract_strided_slice %39 {offsets = [0, 16], sizes = [8, 8], strides = [1, 1]} : vector<8x32xbf16> to vector<8x8xbf16>
    %79 = vector.extract_strided_slice %40 {offsets = [0, 16], sizes = [8, 8], strides = [1, 1]} : vector<8x32xbf16> to vector<8x8xbf16>
    %80 = vector.extract_strided_slice %41 {offsets = [0, 16], sizes = [8, 8], strides = [1, 1]} : vector<8x32xbf16> to vector<8x8xbf16>
    %cst_23 = arith.constant dense<0.000000e+00> : vector<8x8xf32>
    %81 = tpu.matmul %78, %79, %cst_23 {dimension_numbers = #tpu.dot_dimension_numbers<[1], [1], [0], [0], [0, 0, 1, 0], [], []>} : vector<8x8xbf16>, vector<8x8xbf16>, vector<8x8xf32> -> vector<8x8xf32>
    %cst_24 = arith.constant -1.000000e+30 : f32
    %82 = vector.broadcast %cst_24 : f32 to vector<8x8xf32>
    %83 = arith.select %38, %81, %82 : vector<8x8xi1>, vector<8x8xf32>
    %cst_25 = arith.constant dense<0xFF800000> : vector<8xf32>
    %84 = vector.multi_reduction <maximumf>, %83, %cst_25 [1] : vector<8x8xf32> to vector<8xf32>
    %85 = vector.shape_cast %84 : vector<8xf32> to vector<8x1xf32>
    %86 = vector.broadcast %85 : vector<8x1xf32> to vector<8x8xf32>
    %87 = arith.subf %83, %86 : vector<8x8xf32>
    %88 = math.exp %87 : vector<8x8xf32>
    %cst_26 = arith.constant dense<0.000000e+00> : vector<8xf32>
    %89 = vector.multi_reduction <add>, %88, %cst_26 [1] : vector<8x8xf32> to vector<8xf32>
    %90 = vector.shape_cast %89 : vector<8xf32> to vector<8x1xf32>
    %91 = tpu.reciprocal %90 {approx = true} : vector<8x1xf32> -> vector<8x1xf32>
    %92 = vector.broadcast %91 : vector<8x1xf32> to vector<8x8xf32>
    %93 = arith.mulf %88, %92 : vector<8x8xf32>
    %94 = arith.truncf %93 : vector<8x8xf32> to vector<8x8xbf16>
    %cst_27 = arith.constant dense<0.000000e+00> : vector<8x8xf32>
    %95 = tpu.matmul %94, %80, %cst_27 {dimension_numbers = #tpu.dot_dimension_numbers<[1], [0], [0], [1], [0, 0, 1, 1], [], []>} : vector<8x8xbf16>, vector<8x8xbf16>, vector<8x8xf32> -> vector<8x8xf32>
    %96 = vector.extract_strided_slice %39 {offsets = [0, 24], sizes = [8, 8], strides = [1, 1]} : vector<8x32xbf16> to vector<8x8xbf16>
    %97 = vector.extract_strided_slice %40 {offsets = [0, 24], sizes = [8, 8], strides = [1, 1]} : vector<8x32xbf16> to vector<8x8xbf16>
    %98 = vector.extract_strided_slice %41 {offsets = [0, 24], sizes = [8, 8], strides = [1, 1]} : vector<8x32xbf16> to vector<8x8xbf16>
    %cst_28 = arith.constant dense<0.000000e+00> : vector<8x8xf32>
    %99 = tpu.matmul %96, %97, %cst_28 {dimension_numbers = #tpu.dot_dimension_numbers<[1], [1], [0], [0], [0, 0, 1, 0], [], []>} : vector<8x8xbf16>, vector<8x8xbf16>, vector<8x8xf32> -> vector<8x8xf32>
    %cst_29 = arith.constant -1.000000e+30 : f32
    %100 = vector.broadcast %cst_29 : f32 to vector<8x8xf32>
    %101 = arith.select %38, %99, %100 : vector<8x8xi1>, vector<8x8xf32>
    %cst_30 = arith.constant dense<0xFF800000> : vector<8xf32>
    %102 = vector.multi_reduction <maximumf>, %101, %cst_30 [1] : vector<8x8xf32> to vector<8xf32>
    %103 = vector.shape_cast %102 : vector<8xf32> to vector<8x1xf32>
    %104 = vector.broadcast %103 : vector<8x1xf32> to vector<8x8xf32>
    %105 = arith.subf %101, %104 : vector<8x8xf32>
    %106 = math.exp %105 : vector<8x8xf32>
    %cst_31 = arith.constant dense<0.000000e+00> : vector<8xf32>
    %107 = vector.multi_reduction <add>, %106, %cst_31 [1] : vector<8x8xf32> to vector<8xf32>
    %108 = vector.shape_cast %107 : vector<8xf32> to vector<8x1xf32>
    %109 = tpu.reciprocal %108 {approx = true} : vector<8x1xf32> -> vector<8x1xf32>
    %110 = vector.broadcast %109 : vector<8x1xf32> to vector<8x8xf32>
    %111 = arith.mulf %106, %110 : vector<8x8xf32>
    %112 = arith.truncf %111 : vector<8x8xf32> to vector<8x8xbf16>
    %cst_32 = arith.constant dense<0.000000e+00> : vector<8x8xf32>
    %113 = tpu.matmul %112, %98, %cst_32 {dimension_numbers = #tpu.dot_dimension_numbers<[1], [0], [0], [1], [0, 0, 1, 1], [], []>} : vector<8x8xbf16>, vector<8x8xbf16>, vector<8x8xf32> -> vector<8x8xf32>
    %114 = tpu.concatenate %59, %77, %95, %113 in 1 : vector<8x8xf32>, vector<8x8xf32>, vector<8x8xf32>, vector<8x8xf32> -> vector<8x32xf32>
    %115 = vector.extract_strided_slice %31 {offsets = [8, 0], sizes = [8, 32], strides = [1, 1]} : vector<16x32xbf16> to vector<8x32xbf16>
    %116 = vector.extract_strided_slice %33 {offsets = [8, 0], sizes = [8, 32], strides = [1, 1]} : vector<16x32xbf16> to vector<8x32xbf16>
    %117 = vector.extract_strided_slice %35 {offsets = [8, 0], sizes = [8, 32], strides = [1, 1]} : vector<16x32xbf16> to vector<8x32xbf16>
    %118 = vector.extract_strided_slice %115 {offsets = [0, 0], sizes = [8, 8], strides = [1, 1]} : vector<8x32xbf16> to vector<8x8xbf16>
    %119 = vector.extract_strided_slice %116 {offsets = [0, 0], sizes = [8, 8], strides = [1, 1]} : vector<8x32xbf16> to vector<8x8xbf16>
    %120 = vector.extract_strided_slice %117 {offsets = [0, 0], sizes = [8, 8], strides = [1, 1]} : vector<8x32xbf16> to vector<8x8xbf16>
    %cst_33 = arith.constant dense<0.000000e+00> : vector<8x8xf32>
    %121 = tpu.matmul %118, %119, %cst_33 {dimension_numbers = #tpu.dot_dimension_numbers<[1], [1], [0], [0], [0, 0, 1, 0], [], []>} : vector<8x8xbf16>, vector<8x8xbf16>, vector<8x8xf32> -> vector<8x8xf32>
    %cst_34 = arith.constant -1.000000e+30 : f32
    %122 = vector.broadcast %cst_34 : f32 to vector<8x8xf32>
    %123 = arith.select %38, %121, %122 : vector<8x8xi1>, vector<8x8xf32>
    %cst_35 = arith.constant dense<0xFF800000> : vector<8xf32>
    %124 = vector.multi_reduction <maximumf>, %123, %cst_35 [1] : vector<8x8xf32> to vector<8xf32>
    %125 = vector.shape_cast %124 : vector<8xf32> to vector<8x1xf32>
    %126 = vector.broadcast %125 : vector<8x1xf32> to vector<8x8xf32>
    %127 = arith.subf %123, %126 : vector<8x8xf32>
    %128 = math.exp %127 : vector<8x8xf32>
    %cst_36 = arith.constant dense<0.000000e+00> : vector<8xf32>
    %129 = vector.multi_reduction <add>, %128, %cst_36 [1] : vector<8x8xf32> to vector<8xf32>
    %130 = vector.shape_cast %129 : vector<8xf32> to vector<8x1xf32>
    %131 = tpu.reciprocal %130 {approx = true} : vector<8x1xf32> -> vector<8x1xf32>
    %132 = vector.broadcast %131 : vector<8x1xf32> to vector<8x8xf32>
    %133 = arith.mulf %128, %132 : vector<8x8xf32>
    %134 = arith.truncf %133 : vector<8x8xf32> to vector<8x8xbf16>
    %cst_37 = arith.constant dense<0.000000e+00> : vector<8x8xf32>
    %135 = tpu.matmul %134, %120, %cst_37 {dimension_numbers = #tpu.dot_dimension_numbers<[1], [0], [0], [1], [0, 0, 1, 1], [], []>} : vector<8x8xbf16>, vector<8x8xbf16>, vector<8x8xf32> -> vector<8x8xf32>
    %136 = vector.extract_strided_slice %115 {offsets = [0, 8], sizes = [8, 8], strides = [1, 1]} : vector<8x32xbf16> to vector<8x8xbf16>
    %137 = vector.extract_strided_slice %116 {offsets = [0, 8], sizes = [8, 8], strides = [1, 1]} : vector<8x32xbf16> to vector<8x8xbf16>
    %138 = vector.extract_strided_slice %117 {offsets = [0, 8], sizes = [8, 8], strides = [1, 1]} : vector<8x32xbf16> to vector<8x8xbf16>
    %cst_38 = arith.constant dense<0.000000e+00> : vector<8x8xf32>
    %139 = tpu.matmul %136, %137, %cst_38 {dimension_numbers = #tpu.dot_dimension_numbers<[1], [1], [0], [0], [0, 0, 1, 0], [], []>} : vector<8x8xbf16>, vector<8x8xbf16>, vector<8x8xf32> -> vector<8x8xf32>
    %cst_39 = arith.constant -1.000000e+30 : f32
    %140 = vector.broadcast %cst_39 : f32 to vector<8x8xf32>
    %141 = arith.select %38, %139, %140 : vector<8x8xi1>, vector<8x8xf32>
    %cst_40 = arith.constant dense<0xFF800000> : vector<8xf32>
    %142 = vector.multi_reduction <maximumf>, %141, %cst_40 [1] : vector<8x8xf32> to vector<8xf32>
    %143 = vector.shape_cast %142 : vector<8xf32> to vector<8x1xf32>
    %144 = vector.broadcast %143 : vector<8x1xf32> to vector<8x8xf32>
    %145 = arith.subf %141, %144 : vector<8x8xf32>
    %146 = math.exp %145 : vector<8x8xf32>
    %cst_41 = arith.constant dense<0.000000e+00> : vector<8xf32>
    %147 = vector.multi_reduction <add>, %146, %cst_41 [1] : vector<8x8xf32> to vector<8xf32>
    %148 = vector.shape_cast %147 : vector<8xf32> to vector<8x1xf32>
    %149 = tpu.reciprocal %148 {approx = true} : vector<8x1xf32> -> vector<8x1xf32>
    %150 = vector.broadcast %149 : vector<8x1xf32> to vector<8x8xf32>
    %151 = arith.mulf %146, %150 : vector<8x8xf32>
    %152 = arith.truncf %151 : vector<8x8xf32> to vector<8x8xbf16>
    %cst_42 = arith.constant dense<0.000000e+00> : vector<8x8xf32>
    %153 = tpu.matmul %152, %138, %cst_42 {dimension_numbers = #tpu.dot_dimension_numbers<[1], [0], [0], [1], [0, 0, 1, 1], [], []>} : vector<8x8xbf16>, vector<8x8xbf16>, vector<8x8xf32> -> vector<8x8xf32>
    %154 = vector.extract_strided_slice %115 {offsets = [0, 16], sizes = [8, 8], strides = [1, 1]} : vector<8x32xbf16> to vector<8x8xbf16>
    %155 = vector.extract_strided_slice %116 {offsets = [0, 16], sizes = [8, 8], strides = [1, 1]} : vector<8x32xbf16> to vector<8x8xbf16>
    %156 = vector.extract_strided_slice %117 {offsets = [0, 16], sizes = [8, 8], strides = [1, 1]} : vector<8x32xbf16> to vector<8x8xbf16>
    %cst_43 = arith.constant dense<0.000000e+00> : vector<8x8xf32>
    %157 = tpu.matmul %154, %155, %cst_43 {dimension_numbers = #tpu.dot_dimension_numbers<[1], [1], [0], [0], [0, 0, 1, 0], [], []>} : vector<8x8xbf16>, vector<8x8xbf16>, vector<8x8xf32> -> vector<8x8xf32>
    %cst_44 = arith.constant -1.000000e+30 : f32
    %158 = vector.broadcast %cst_44 : f32 to vector<8x8xf32>
    %159 = arith.select %38, %157, %158 : vector<8x8xi1>, vector<8x8xf32>
    %cst_45 = arith.constant dense<0xFF800000> : vector<8xf32>
    %160 = vector.multi_reduction <maximumf>, %159, %cst_45 [1] : vector<8x8xf32> to vector<8xf32>
    %161 = vector.shape_cast %160 : vector<8xf32> to vector<8x1xf32>
    %162 = vector.broadcast %161 : vector<8x1xf32> to vector<8x8xf32>
    %163 = arith.subf %159, %162 : vector<8x8xf32>
    %164 = math.exp %163 : vector<8x8xf32>
    %cst_46 = arith.constant dense<0.000000e+00> : vector<8xf32>
    %165 = vector.multi_reduction <add>, %164, %cst_46 [1] : vector<8x8xf32> to vector<8xf32>
    %166 = vector.shape_cast %165 : vector<8xf32> to vector<8x1xf32>
    %167 = tpu.reciprocal %166 {approx = true} : vector<8x1xf32> -> vector<8x1xf32>
    %168 = vector.broadcast %167 : vector<8x1xf32> to vector<8x8xf32>
    %169 = arith.mulf %164, %168 : vector<8x8xf32>
    %170 = arith.truncf %169 : vector<8x8xf32> to vector<8x8xbf16>
    %cst_47 = arith.constant dense<0.000000e+00> : vector<8x8xf32>
    %171 = tpu.matmul %170, %156, %cst_47 {dimension_numbers = #tpu.dot_dimension_numbers<[1], [0], [0], [1], [0, 0, 1, 1], [], []>} : vector<8x8xbf16>, vector<8x8xbf16>, vector<8x8xf32> -> vector<8x8xf32>
    %172 = vector.extract_strided_slice %115 {offsets = [0, 24], sizes = [8, 8], strides = [1, 1]} : vector<8x32xbf16> to vector<8x8xbf16>
    %173 = vector.extract_strided_slice %116 {offsets = [0, 24], sizes = [8, 8], strides = [1, 1]} : vector<8x32xbf16> to vector<8x8xbf16>
    %174 = vector.extract_strided_slice %117 {offsets = [0, 24], sizes = [8, 8], strides = [1, 1]} : vector<8x32xbf16> to vector<8x8xbf16>
    %cst_48 = arith.constant dense<0.000000e+00> : vector<8x8xf32>
    %175 = tpu.matmul %172, %173, %cst_48 {dimension_numbers = #tpu.dot_dimension_numbers<[1], [1], [0], [0], [0, 0, 1, 0], [], []>} : vector<8x8xbf16>, vector<8x8xbf16>, vector<8x8xf32> -> vector<8x8xf32>
    %cst_49 = arith.constant -1.000000e+30 : f32
    %176 = vector.broadcast %cst_49 : f32 to vector<8x8xf32>
    %177 = arith.select %38, %175, %176 : vector<8x8xi1>, vector<8x8xf32>
    %cst_50 = arith.constant dense<0xFF800000> : vector<8xf32>
    %178 = vector.multi_reduction <maximumf>, %177, %cst_50 [1] : vector<8x8xf32> to vector<8xf32>
    %179 = vector.shape_cast %178 : vector<8xf32> to vector<8x1xf32>
    %180 = vector.broadcast %179 : vector<8x1xf32> to vector<8x8xf32>
    %181 = arith.subf %177, %180 : vector<8x8xf32>
    %182 = math.exp %181 : vector<8x8xf32>
    %cst_51 = arith.constant dense<0.000000e+00> : vector<8xf32>
    %183 = vector.multi_reduction <add>, %182, %cst_51 [1] : vector<8x8xf32> to vector<8xf32>
    %184 = vector.shape_cast %183 : vector<8xf32> to vector<8x1xf32>
    %185 = tpu.reciprocal %184 {approx = true} : vector<8x1xf32> -> vector<8x1xf32>
    %186 = vector.broadcast %185 : vector<8x1xf32> to vector<8x8xf32>
    %187 = arith.mulf %182, %186 : vector<8x8xf32>
    %188 = arith.truncf %187 : vector<8x8xf32> to vector<8x8xbf16>
    %cst_52 = arith.constant dense<0.000000e+00> : vector<8x8xf32>
    %189 = tpu.matmul %188, %174, %cst_52 {dimension_numbers = #tpu.dot_dimension_numbers<[1], [0], [0], [1], [0, 0, 1, 1], [], []>} : vector<8x8xbf16>, vector<8x8xbf16>, vector<8x8xf32> -> vector<8x8xf32>
    %190 = tpu.concatenate %135, %153, %171, %189 in 1 : vector<8x8xf32>, vector<8x8xf32>, vector<8x8xf32>, vector<8x8xf32> -> vector<8x32xf32>
    %191 = tpu.concatenate %114, %190 in 0 : vector<8x32xf32>, vector<8x32xf32> -> vector<16x32xf32>
    %192 = arith.truncf %191 : vector<16x32xf32> to vector<16x32xbf16>
    %c0_53 = arith.constant 0 : index
    %c0_54 = arith.constant 0 : index
    %193 = vector.load %arg5[%c0_53, %c0_54] : memref<32x32xbf16, #tpu.memory_space<vmem>>, vector<32x32xbf16>
    %cst_55 = arith.constant dense<0.000000e+00> : vector<16x32xf32>
    %194 = tpu.matmul %192, %193, %cst_55 {dimension_numbers = #tpu.dot_dimension_numbers<[1], [0], [0], [1], [0, 0, 1, 1], [], []>} : vector<16x32xbf16>, vector<32x32xbf16>, vector<16x32xf32> -> vector<16x32xf32>
    %c0_56 = arith.constant 0 : index
    %c0_57 = arith.constant 0 : index
    %195 = vector.load %arg6[%c0_56, %c0_57] : memref<1x32xf32, #tpu.memory_space<vmem>>, vector<1x32xf32>
    %196 = vector.broadcast %195 : vector<1x32xf32> to vector<16x32xf32>
    %197 = arith.addf %194, %196 : vector<16x32xf32>
    %198 = arith.addf %0, %197 : vector<16x32xf32>
    %c0_58 = arith.constant 0 : index
    %c0_59 = arith.constant 0 : index
    %199 = vector.load %arg7[%c0_58, %c0_59] : memref<1x32xf32, #tpu.memory_space<vmem>>, vector<1x32xf32>
    %c0_60 = arith.constant 0 : index
    %c0_61 = arith.constant 0 : index
    %200 = vector.load %arg8[%c0_60, %c0_61] : memref<1x32xf32, #tpu.memory_space<vmem>>, vector<1x32xf32>
    %cst_62 = arith.constant dense<0.000000e+00> : vector<16xf32>
    %201 = vector.multi_reduction <add>, %198, %cst_62 [1] : vector<16x32xf32> to vector<16xf32>
    %202 = vector.shape_cast %201 : vector<16xf32> to vector<16x1xf32>
    %cst_63 = arith.constant 3.200000e+01 : f32
    %203 = vector.broadcast %cst_63 : f32 to vector<16x1xf32>
    %204 = arith.divf %202, %203 : vector<16x1xf32>
    %205 = vector.broadcast %204 : vector<16x1xf32> to vector<16x32xf32>
    %206 = arith.subf %198, %205 : vector<16x32xf32>
    %207 = arith.mulf %206, %206 : vector<16x32xf32>
    %cst_64 = arith.constant dense<0.000000e+00> : vector<16xf32>
    %208 = vector.multi_reduction <add>, %207, %cst_64 [1] : vector<16x32xf32> to vector<16xf32>
    %209 = vector.shape_cast %208 : vector<16xf32> to vector<16x1xf32>
    %cst_65 = arith.constant 3.200000e+01 : f32
    %210 = vector.broadcast %cst_65 : f32 to vector<16x1xf32>
    %211 = arith.divf %209, %210 : vector<16x1xf32>
    %212 = vector.broadcast %204 : vector<16x1xf32> to vector<16x32xf32>
    %213 = arith.subf %198, %212 : vector<16x32xf32>
    %cst_66 = arith.constant 9.99999974E-6 : f32
    %214 = vector.broadcast %cst_66 : f32 to vector<16x1xf32>
    %215 = arith.addf %211, %214 : vector<16x1xf32>
    %216 = math.rsqrt %215 : vector<16x1xf32>
    %217 = vector.broadcast %216 : vector<16x1xf32> to vector<16x32xf32>
    %218 = arith.mulf %213, %217 : vector<16x32xf32>
    %219 = vector.broadcast %199 : vector<1x32xf32> to vector<16x32xf32>
    %220 = arith.mulf %218, %219 : vector<16x32xf32>
    %221 = vector.broadcast %200 : vector<1x32xf32> to vector<16x32xf32>
    %222 = arith.addf %220, %221 : vector<16x32xf32>
    %223 = arith.truncf %222 : vector<16x32xf32> to vector<16x32xbf16>
    %c0_67 = arith.constant 0 : index
    %c0_68 = arith.constant 0 : index
    %224 = vector.load %arg9[%c0_67, %c0_68] : memref<32x128xbf16, #tpu.memory_space<vmem>>, vector<32x128xbf16>
    %cst_69 = arith.constant dense<0.000000e+00> : vector<16x128xf32>
    %225 = tpu.matmul %223, %224, %cst_69 {dimension_numbers = #tpu.dot_dimension_numbers<[1], [0], [0], [1], [0, 0, 1, 1], [], []>} : vector<16x32xbf16>, vector<32x128xbf16>, vector<16x128xf32> -> vector<16x128xf32>
    %c0_70 = arith.constant 0 : index
    %c0_71 = arith.constant 0 : index
    %226 = vector.load %arg10[%c0_70, %c0_71] : memref<1x128xf32, #tpu.memory_space<vmem>>, vector<1x128xf32>
    %227 = vector.broadcast %226 : vector<1x128xf32> to vector<16x128xf32>
    %228 = arith.addf %225, %227 : vector<16x128xf32>
    %cst_72 = arith.constant 0.000000e+00 : f32
    %229 = vector.broadcast %cst_72 : f32 to vector<16x128xf32>
    %230 = arith.maximumf %228, %229 : vector<16x128xf32>
    %231 = arith.truncf %230 : vector<16x128xf32> to vector<16x128xbf16>
    %c0_73 = arith.constant 0 : index
    %c0_74 = arith.constant 0 : index
    %232 = vector.load %arg11[%c0_73, %c0_74] : memref<128x32xbf16, #tpu.memory_space<vmem>>, vector<128x32xbf16>
    %cst_75 = arith.constant dense<0.000000e+00> : vector<16x32xf32>
    %233 = tpu.matmul %231, %232, %cst_75 {dimension_numbers = #tpu.dot_dimension_numbers<[1], [0], [0], [1], [0, 0, 1, 1], [], []>} : vector<16x128xbf16>, vector<128x32xbf16>, vector<16x32xf32> -> vector<16x32xf32>
    %c0_76 = arith.constant 0 : index
    %c0_77 = arith.constant 0 : index
    %234 = vector.load %arg12[%c0_76, %c0_77] : memref<1x32xf32, #tpu.memory_space<vmem>>, vector<1x32xf32>
    %235 = vector.broadcast %234 : vector<1x32xf32> to vector<16x32xf32>
    %236 = arith.addf %233, %235 : vector<16x32xf32>
    %237 = arith.addf %198, %236 : vector<16x32xf32>
    %c0_78 = arith.constant 0 : index
    %c0_79 = arith.constant 0 : index
    %238 = vector.load %arg13[%c0_78, %c0_79] : memref<16x32xf32, #tpu.memory_space<vmem>>, vector<16x32xf32>
    tpu.vector_store %arg13[%c0_78, %c0_79], %237 {strides = array<i32>} : memref<16x32xf32, #tpu.memory_space<vmem>>, vector<16x32xf32>,
    return
  }
  func.func @transform_0(%arg0: i32) -> (i32, i32) {
    %c0_i32 = arith.constant 0 : i32
    %c0_i32_0 = arith.constant 0 : i32
    return %arg0, %c0_i32 : i32, i32
  }
  func.func @transform_1(%arg0: i32) -> (i32, i32) {
    %c0_i32 = arith.constant 0 : i32
    %c0_i32_0 = arith.constant 0 : i32
    %c0_i32_1 = arith.constant 0 : i32
    return %c0_i32, %c0_i32_0 : i32, i32
  }
  func.func @transform_2(%arg0: i32) -> (i32, i32) {
    %c0_i32 = arith.constant 0 : i32
    %c0_i32_0 = arith.constant 0 : i32
    %c0_i32_1 = arith.constant 0 : i32
    return %c0_i32, %c0_i32_0 : i32, i32
  }
  func.func @transform_3(%arg0: i32) -> (i32, i32) {
    %c0_i32 = arith.constant 0 : i32
    %c0_i32_0 = arith.constant 0 : i32
    %c0_i32_1 = arith.constant 0 : i32
    return %c0_i32, %c0_i32_0 : i32, i32
  }
  func.func @transform_4(%arg0: i32) -> (i32, i32) {
    %c0_i32 = arith.constant 0 : i32
    %c0_i32_0 = arith.constant 0 : i32
    %c0_i32_1 = arith.constant 0 : i32
    return %c0_i32, %c0_i32_0 : i32, i32
  }
  func.func @transform_5(%arg0: i32) -> (i32, i32) {
    %c0_i32 = arith.constant 0 : i32
    %c0_i32_0 = arith.constant 0 : i32
    %c0_i32_1 = arith.constant 0 : i32
    return %c0_i32, %c0_i32_0 : i32, i32
  }
  func.func @transform_6(%arg0: i32) -> (i32, i32) {
    %c0_i32 = arith.constant 0 : i32
    %c0_i32_0 = arith.constant 0 : i32
    %c0_i32_1 = arith.constant 0 : i32
    return %c0_i32, %c0_i32_0 : i32, i32
  }
  func.func @transform_7(%arg0: i32) -> (i32, i32) {
    %c0_i32 = arith.constant 0 : i32
    %c0_i32_0 = arith.constant 0 : i32
    %c0_i32_1 = arith.constant 0 : i32
    return %c0_i32, %c0_i32_0 : i32, i32
  }
  func.func @transform_8(%arg0: i32) -> (i32, i32) {
    %c0_i32 = arith.constant 0 : i32
    %c0_i32_0 = arith.constant 0 : i32
    %c0_i32_1 = arith.constant 0 : i32
    return %c0_i32, %c0_i32_0 : i32, i32
  }
  func.func @transform_9(%arg0: i32) -> (i32, i32) {
    %c0_i32 = arith.constant 0 : i32
    %c0_i32_0 = arith.constant 0 : i32
    %c0_i32_1 = arith.constant 0 : i32
    return %c0_i32, %c0_i32_0 : i32, i32
  }
  func.func @transform_10(%arg0: i32) -> (i32, i32) {
    %c0_i32 = arith.constant 0 : i32
    %c0_i32_0 = arith.constant 0 : i32
    %c0_i32_1 = arith.constant 0 : i32
    return %c0_i32, %c0_i32_0 : i32, i32
  }
  func.func @transform_11(%arg0: i32) -> (i32, i32) {
    %c0_i32 = arith.constant 0 : i32
    %c0_i32_0 = arith.constant 0 : i32
    %c0_i32_1 = arith.constant 0 : i32
    return %c0_i32, %c0_i32_0 : i32, i32
  }
  func.func @transform_12(%arg0: i32) -> (i32, i32) {
    %c0_i32 = arith.constant 0 : i32
    %c0_i32_0 = arith.constant 0 : i32
    return %arg0, %c0_i32 : i32, i32
  }
}

</mosaic_0001>

<bundles_post_ra>
// kernel: tpu_custom_call.1
= control target key start
LH: loop header
LB: loop body
LE: loop exit
PB: predicated region body
PF: predicated region fallthrough
CT: control target
= control target key end

     0   :  { %vm47_vm0 = vcmask 261120   ;;  %s2132_s0 = inlined_call_operand.vmem [shape: f32[16,32], index: 0, kind: input, shape index: {}]   ;;  %s2133_s1 = inlined_call_operand.vmem [shape: f32[1,32], index: 1, kind: input, shape index: {}]   ;;  %s2134_s2 = inlined_call_operand.vmem [shape: f32[1,32], index: 2, kind: input, shape index: {}]   ;;  %s2135_s3 = inlined_call_operand.vmem [shape: bf16[32,96], index: 3, kind: input, shape index: {}]   ;;  %s2136_s4 = inlined_call_operand.vmem [shape: bf16[32,32], index: 4, kind: input, shape index: {}]   ;;  %s2137_s5 = inlined_call_operand.vmem [shape: f32[1,32], index: 5, kind: input, shape index: {}]   ;;  %s2138_s6 = inlined_call_operand.vmem [shape: f32[1,32], index: 6, kind: input, shape index: {}]   ;;  %s2139_s7 = inlined_call_operand.vmem [shape: f32[1,32], index: 7, kind: input, shape index: {}]   ;;  %s2140_s8 = inlined_call_operand.vmem [shape: bf16[32,128], index: 8, kind: input, shape index: {}]   ;;  %s2141_s9 = inlined_call_operand.vmem [shape: f32[1,128], index: 9, kind: input, shape index: {}]   ;;  %s2142_s10 = inlined_call_operand.vmem [shape: bf16[128,32], index: 10, kind: input, shape index: {}]   ;;  %s2143_s11 = inlined_call_operand.vmem [shape: f32[1,32], index: 11, kind: input, shape index: {}]   ;;  %s2144_s12 = inlined_call_operand.hbm [shape: f32[16,32], index: 12, kind: output, shape index: {}]  }
   0x1   :  { %v1825_v0 = vld [vmem:[%s2132_s0] sm:$0xff]  ;;  %v1830_v1 = vld [vmem:[%s2132_s0 + $0x8] sm:$0xff] }
   0x2   :  { %v48_v2 = vsel %vm47_vm0, %v1825_v0, 0.0  ;;  %v51_v3 = vsel %vm47_vm0, %v1830_v1, 0.0 }
   0x3   :  { %49 = vadd.xlane.f32.xlu0 %v48_v2 }
   0x7   :  { %52 = vadd.xlane.f32.xlu0 %v51_v3 }
   0x8   :  { %17 = vsyncpa [#allocation3], 0  ;;  %v1663_v14 = vld [vmem:[%s2135_s3 + $0x8] sm:$0xff]   ;;  %v1739_v15 = vmov 0.0   ;;  %vm1740_vm1 = vmmov 0   ;;  %v1664_v16 = vld [vmem:[%s2135_s3] sm:$0xff]  }
   0x9   :  { %1490 = vmatprep.subr.bf16.mxu0 %v1739_v15  ;;  %1494 = vmatprep.mubr.msk.bf16.mxu0 %vm1740_vm1, %v1739_v15  ;;  %v1400_v25 = vld [vmem:[%s2133_s1] ss:$0 sm:$0xff]  ;;  %s1741_s1 = smov 88   ;;  %s1743_s13 = smov 112   ;;  %vm164_vm2 = vcmask 64512   ;;  %vm229_vm4 = vcmask 1043456  }
   0xa   :  { %1491 = vmatpush3.bf16.msra.mxu0 %v1663_v14  ;;  %1510 = vmatprep.subr.bf16.mxu1 %v1739_v15  ;;  %v1401_v29 = vld [vmem:[%s2134_s2] ss:$0 sm:$0xff]  ;;  %s1742_s2 = smov 96   ;;  %s1744_s14 = smov 120   ;;  %vm620_vm5 = vcmask 130048   ;;  %vm622_vm6 = vcmask 195584  }
   0xb   :  { %1492 = vmatprep.subr.bf16.mxu0 %v1739_v15  ;;  %1512 = vmatprep.mubr.msk.bf16.mxu1 %vm1740_vm1, %v1739_v15  ;;  %s1745_s15 = smov 104   ;;  %s1746_s16 = smov 80  }
   0xc   :  { %s1747_s17 = smov 72   ;;  %s1748_s18 = smov 56  }
   0xd   :  { %s1749_s19 = smov 64   ;;  %s1750_s20 = smov 48  }
   0xe   :  { %1493 = vmatpush3.bf16.msra.mxu0 %v1664_v16  ;;  %s1751_s21 = smov 40   ;;  %s1752_s22 = smov 8  }
   0xf   :  { %1498 = vmatprep.subr.bf16.mxu0 %v1739_v15  ;;  %s1753_s0 = smov 16   ;;  %s1754_s27 = smov 24  }
  0x8c   :  { %v50_v4 = vpop.xlane.xlu0 %49 }
  0x8d   :  { %v55_v5 = vmul.f32 0.03125, %v50_v4  ;;  %v156_v4 = vlaneseq }
  0x8f   :  { %v57_v6 = vsub.f32 %v1825_v0, %v55_v5  ;;  %v157_v5 = vshrl.u32 %v156_v4, 7 }
  0x90   :  { %v53_v7 = vpop.xlane.xlu0 %52 }
  0x91   :  { %v56_v8 = vmul.f32 0.03125, %v53_v7  ;;  %v59_v9 = vmul.f32 %v57_v6, %v57_v6 }
  0x93   :  { %v58_v10 = vsub.f32 %v1830_v1, %v56_v8  ;;  %v61_v11 = vsel %vm47_vm0, %v59_v9, 0.0 }
  0x94   :  { %62 = vadd.xlane.f32.xlu1 %v61_v11 }
  0x95   :  { %v60_v12 = vmul.f32 %v58_v10, %v58_v10 }
  0x97   :  { %v64_v13 = vsel %vm47_vm0, %v60_v12, 0.0 }
  0x98   :  { %65 = vadd.xlane.f32.xlu1 %v64_v13 }
 0x11d   :  { %v63_v17 = vpop.xlane.xlu1 %62 }
 0x11e   :  { %v67_v18 = vmul.f32 0.03125, %v63_v17 }
 0x120   :  { %v69_v19 = vadd.f32 1e-05, %v67_v18 }
 0x121   :  { %v66_v20 = vpop.xlane.xlu1 %65 }
 0x122   :  { %1677 = vrsqrt.f32 %v69_v19  ;;  %v68_v21 = vmul.f32 0.03125, %v66_v20 }
 0x124   :  { %v70_v22 = vadd.f32 1e-05, %v68_v21 }
 0x126   :  { %1679 = vrsqrt.f32 %v70_v22 }
 0x12f   :  { %v1678_v23 = vpop.eup %1677 }
 0x130   :  { %v73_v24 = vmul.f32 %v1678_v23, %v57_v6  ;;  %v159_v6 = vand.u32 127, %v156_v4 }
 0x132   :  { %v81_v28 = vmul.f32 %v1400_v25, %v73_v24  ;;  %vm1916_vm3 = vcmp.le.s32.totalorder %v159_v6, %v157_v5 }
 0x133   :  { %v1680_v26 = vpop.eup %1679 }
 0x134   :  { %v74_v27 = vmul.f32 %v1680_v26, %v58_v10  ;;  %v89_v31 = vadd.f32 %v1401_v29, %v81_v28 }
 0x136   :  { %v82_v30 = vmul.f32 %v1400_v25, %v74_v27 }
 0x138   :  { %v90_v32 = vadd.f32 %v1401_v29, %v82_v30 }
 0x13a   :  { %v91_v33 = vpack.c.bf16 %v90_v32, %v89_v31 }
 0x13c   :  { %1495 = vmatmul.mubr.msk.bf16.vlgmr.msra.gmra.mxu0 %vm47_vm0, %v91_v33 }
 0x13d   :  { %1500 = vmatprep.mubr.msk.bf16.mxu0 %vm1740_vm1, %v1739_v15 }
 0x1fc   :  { %v145_v34 = vpop.f32.mrf.mxu0 }
 0x1fd   :  { %v152_v40 = vmul.f32 0.17677669, %v145_v34 }
 0x1fe   :  { %v1496_v35 = vpop.f32.mrf.mxu0 }
 0x200   :  { %v148_v36 = vpop.f32.mrf.mxu0 }
 0x201   :  { %v153_v37 = vmul.f32 0.17677669, %v148_v36  ;;  %v1863_v38 = vpack.c.bf16 %v148_v36, %v145_v34 }
 0x202   :  { %v1497_v39 = vpop.f32.mrf.mxu0 }
 0x203   :  { %276 = vrot.lane.b32.xlu1 %v1863_v38, %s1741_s1  ;;  %162 = vrot.lane.b32.xlu0 %v1863_v38, %s1742_s2  ;;  %v154_v41 = vpack.c.bf16 %v153_v37, %v152_v40  ;;  %v1869_v42 = vrot.slane %v1863_v38, 4 }
 0x205   :  { %v624_v43 = vrot.slane %v154_v41, 4 }
 0x207   :  { %385 = vrot.lane.b32.xlu0 %v154_v41, %s1743_s13  ;;  %274 = vrot.lane.b32.xlu1 %v154_v41, %s1744_s14 }
 0x20b   :  { %496 = vrot.lane.b32.xlu0 %v154_v41, %s1745_s15  ;;  %387 = vrot.lane.b32.xlu1 %v1863_v38, %s1746_s16 }
 0x20f   :  { %737 = vrot.lane.b32.xlu0 %v1869_v42, %s1741_s1  ;;  %498 = vrot.lane.b32.xlu1 %v1863_v38, %s1747_s17 }
 0x213   :  { %848 = vrot.lane.b32.xlu0 %v1869_v42, %s1746_s16  ;;  %626 = vrot.lane.b32.xlu1 %v1869_v42, %s1742_s2 }
 0x217   :  { %959 = vrot.lane.b32.xlu0 %v1869_v42, %s1747_s17  ;;  %735 = vrot.lane.b32.xlu1 %v624_v43, %s1744_s14 }
 0x21b   :  { %846 = vrot.lane.b32.xlu1 %v624_v43, %s1743_s13 }
 0x21f   :  { %957 = vrot.lane.b32.xlu1 %v624_v43, %s1745_s15 }
 0x275   :  { %v277_v44 = vpop.permute.xlu1 %276  ;;  %v163_v45 = vpop.permute.xlu0 %162 }
 0x276   :  { %v169_v46 = vsel %vm164_vm2, %v163_v45, 0  ;;  %v282_v47 = vsel %vm164_vm2, %v277_v44, 0 }
 0x277   :  { %1499 = vmatpush3.bf16.xpose.msra.mxu0 %v169_v46  ;;  %1511 = vmatpush3.bf16.xpose.msra.mxu1 %v282_v47 }
 0x278   :  { %1522 = vmatprep.subr.bf16.mxu1 %v1739_v15  ;;  %1504 = vmatprep.subr.bf16.mxu0 %v1739_v15 }
 0x279   :  { %v275_v48 = vpop.permute.xlu1 %274  ;;  %v386_v52 = vpop.permute.xlu0 %385 }
 0x27d   :  { %v388_v49 = vpop.permute.xlu1 %387  ;;  %v497_v55 = vpop.permute.xlu0 %496 }
 0x27e   :  { %v393_v50 = vsel %vm164_vm2, %v388_v49, 0  ;;  %1501 = vmatmul.mubr.msk.bf16.vlgmr.msra.gmra.mxu0 %vm164_vm2, %v154_v41  ;;  %1513 = vmatmul.mubr.msk.bf16.vlgmr.msra.gmra.mxu1 %vm164_vm2, %v275_v48 }
 0x27f   :  { %1523 = vmatpush3.bf16.xpose.msra.mxu1 %v393_v50  ;;  %1524 = vmatprep.mubr.msk.bf16.mxu1 %vm1740_vm1, %v1739_v15 }
 0x280   :  { %1534 = vmatprep.subr.bf16.mxu1 %v1739_v15  ;;  %1506 = vmatprep.mubr.msk.bf16.mxu0 %vm1740_vm1, %v1739_v15 }
 0x281   :  { %v499_v51 = vpop.permute.xlu1 %498  ;;  %v738_v57 = vpop.permute.xlu0 %737 }
 0x282   :  { %v504_v53 = vsel %vm164_vm2, %v499_v51, 0  ;;  %v743_v58 = vsel %vm164_vm2, %v738_v57, 0 }
 0x285   :  { %v627_v54 = vpop.permute.xlu1 %626  ;;  %v849_v59 = vpop.permute.xlu0 %848 }
 0x286   :  { %1525 = vmatmul.mubr.msk.bf16.vlgmr.msra.gmra.mxu1 %vm164_vm2, %v386_v52  ;;  %v632_v56 = vsel %vm164_vm2, %v627_v54, 0  ;;  %v854_v61 = vsel %vm164_vm2, %v849_v59, 0 }
 0x287   :  { %1535 = vmatpush3.bf16.xpose.msra.mxu1 %v504_v53  ;;  %1536 = vmatprep.mubr.msk.bf16.mxu1 %vm1740_vm1, %v1739_v15 }
 0x288   :  { %1546 = vmatprep.subr.bf16.mxu1 %v1739_v15 }
 0x289   :  { %v736_v60 = vpop.permute.xlu1 %735  ;;  %v960_v62 = vpop.permute.xlu0 %959 }
 0x28a   :  { %v965_v2 = vsel %vm164_vm2, %v960_v62, 0 }
 0x28d   :  { %v847_v63 = vpop.permute.xlu1 %846 }
 0x28e   :  { %1537 = vmatmul.mubr.msk.bf16.vlgmr.msra.gmra.mxu1 %vm164_vm2, %v497_v55 }
 0x28f   :  { %1547 = vmatpush3.bf16.xpose.msra.mxu1 %v632_v56  ;;  %1548 = vmatprep.mubr.msk.bf16.mxu1 %vm1740_vm1, %v1739_v15 }
 0x290   :  { %1558 = vmatprep.subr.bf16.mxu1 %v1739_v15 }
 0x291   :  { %v958_v3 = vpop.permute.xlu1 %957 }
 0x296   :  { %1549 = vmatmul.mubr.msk.bf16.vlgmr.msra.gmra.mxu1 %vm164_vm2, %v624_v43 }
 0x297   :  { %1559 = vmatpush3.bf16.xpose.msra.mxu1 %v743_v58  ;;  %1560 = vmatprep.mubr.msk.bf16.mxu1 %vm1740_vm1, %v1739_v15 }
 0x298   :  { %1570 = vmatprep.subr.bf16.mxu1 %v1739_v15 }
 0x29e   :  { %1561 = vmatmul.mubr.msk.bf16.vlgmr.msra.gmra.mxu1 %vm164_vm2, %v736_v60 }
 0x29f   :  { %1571 = vmatpush3.bf16.xpose.msra.mxu1 %v854_v61  ;;  %1572 = vmatprep.mubr.msk.bf16.mxu1 %vm1740_vm1, %v1739_v15 }
 0x2a0   :  { %1582 = vmatprep.subr.bf16.mxu1 %v1739_v15 }
 0x2a6   :  { %1573 = vmatmul.mubr.msk.bf16.vlgmr.msra.gmra.mxu1 %vm164_vm2, %v847_v63 }
 0x2a7   :  { %1583 = vmatpush3.bf16.xpose.msra.mxu1 %v965_v2  ;;  %1584 = vmatprep.mubr.msk.bf16.mxu1 %vm1740_vm1, %v1739_v15 }
 0x2a8   :  { %1594 = vmatprep.subr.bf16.mxu1 %v1739_v15 }
 0x2ae   :  { %1585 = vmatmul.mubr.msk.bf16.vlgmr.msra.gmra.mxu1 %vm164_vm2, %v958_v3 }
 0x2af   :  { %1598 = vmatprep.mubr.msk.bf16.mxu1 %vm1740_vm1, %v1739_v15 }
 0x33e   :  { %v205_v8 = vpop.f32.mrf.mxu0  ;;  %v318_v9 = vpop.f32.mrf.mxu1 }
 0x33f   :  { %v1922_v10 = vsel %vm1916_vm3, %v205_v8, -1e+30  ;;  %v1926_v11 = vsel %vm1916_vm3, %v318_v9, -1e+30 }
 0x340   :  { %v1502_v12 = vpop.f32.mrf.mxu0  ;;  %v1514_v13 = vpop.f32.mrf.mxu1  ;;  %v325_v14 = vsel %vm164_vm2, %v1926_v11, -inf  ;;  %v212_v16 = vsel %vm164_vm2, %v1922_v10, -inf }
 0x341   :  { %326 = vmax.xlane.f32.xlu1 %v325_v14  ;;  %213 = vmax.xlane.f32.xlu0 %v212_v16 }
 0x342   :  { %v208_v17 = vpop.f32.mrf.mxu0  ;;  %v321_v18 = vpop.f32.mrf.mxu1 }
 0x344   :  { %v1503_v19 = vpop.f32.mrf.mxu0  ;;  %v1515_v20 = vpop.f32.mrf.mxu1 }
 0x346   :  { %v429_v21 = vpop.f32.mrf.mxu1 }
 0x347   :  { %v435_v45 = vsel %vm1916_vm3, %v429_v21, -1e+30 }
 0x348   :  { %v1526_v22 = vpop.f32.mrf.mxu1  ;;  %v436_v50 = vsel %vm164_vm2, %v435_v45, -inf }
 0x34a   :  { %v432_v23 = vpop.f32.mrf.mxu1 }
 0x34c   :  { %v1527_v24 = vpop.f32.mrf.mxu1 }
 0x34e   :  { %v540_v25 = vpop.f32.mrf.mxu1 }
 0x34f   :  { %v546_v51 = vsel %vm1916_vm3, %v540_v25, -1e+30 }
 0x350   :  { %v1538_v26 = vpop.f32.mrf.mxu1  ;;  %v547_v54 = vsel %vm164_vm2, %v546_v51, -inf }
 0x352   :  { %v543_v27 = vpop.f32.mrf.mxu1  ;;  %337 = vrot.lane.b32.xlu1 %v1863_v38, %s1748_s18 }
 0x354   :  { %v1539_v28 = vpop.f32.mrf.mxu1 }
 0x356   :  { %v668_v29 = vpop.f32.mrf.mxu1 }
 0x357   :  { %224 = vrot.lane.b32.xlu0 %v1863_v38, %s1749_s19  ;;  %v674_v55 = vsel %vm1916_vm3, %v668_v29, -1e+30 }
 0x358   :  { %v1550_v30 = vpop.f32.mrf.mxu1  ;;  %v675_v56 = vsel %vm164_vm2, %v674_v55, -inf }
 0x35a   :  { %v671_v31 = vpop.f32.mrf.mxu1 }
 0x35c   :  { %v1551_v32 = vpop.f32.mrf.mxu1 }
 0x35e   :  { %v779_v33 = vpop.f32.mrf.mxu1 }
 0x35f   :  { %v785_v46 = vsel %vm1916_vm3, %v779_v33, -1e+30 }
 0x360   :  { %v1562_v34 = vpop.f32.mrf.mxu1  ;;  %v786_v49 = vsel %vm164_vm2, %v785_v46, -inf }
 0x362   :  { %v782_v35 = vpop.f32.mrf.mxu1 }
 0x364   :  { %v1563_v36 = vpop.f32.mrf.mxu1 }
 0x366   :  { %v890_v37 = vpop.f32.mrf.mxu1 }
 0x367   :  { %v896_v57 = vsel %vm1916_vm3, %v890_v37, -1e+30 }
 0x368   :  { %v1574_v39 = vpop.f32.mrf.mxu1  ;;  %v897_v58 = vsel %vm164_vm2, %v896_v57, -inf }
 0x36a   :  { %v893_v40 = vpop.f32.mrf.mxu1 }
 0x36c   :  { %v1575_v41 = vpop.f32.mrf.mxu1 }
 0x36e   :  { %v1001_v43 = vpop.f32.mrf.mxu1 }
 0x36f   :  { %v1946_v52 = vsel %vm1916_vm3, %v1001_v43, -1e+30 }
 0x370   :  { %v1586_v44 = vpop.f32.mrf.mxu1  ;;  %v1008_v53 = vsel %vm164_vm2, %v1946_v52, -inf }
 0x372   :  { %v1004_v47 = vpop.f32.mrf.mxu1 }
 0x374   :  { %v1587_v48 = vpop.f32.mrf.mxu1 }
 0x376   :  { %787 = vmax.xlane.f32.xlu1 %v786_v49  ;;  %437 = vmax.xlane.f32.xlu0 %v436_v50 }
 0x37a   :  { %1009 = vmax.xlane.f32.xlu1 %v1008_v53  ;;  %548 = vmax.xlane.f32.xlu0 %v547_v54 }
 0x37e   :  { %676 = vmax.xlane.f32.xlu0 %v675_v56 }
 0x382   :  { %898 = vmax.xlane.f32.xlu0 %v897_v58 }
 0x398   :  { %448 = vrot.lane.b32.xlu0 %v1863_v38, %s1750_s20 }
 0x3ca   :  { %v327_v59 = vpop.xlane.xlu1 %326  ;;  %v214_v60 = vpop.xlane.xlu0 %213 }
 0x3cb   :  { %v328_v61 = vsub.f32 %v1926_v11, %v327_v59  ;;  %v215_v62 = vsub.f32 %v1922_v10, %v214_v60 }
 0x3cd   :  { %v329_v63 = vmul.f32 1.442695, %v328_v61  ;;  %v216_v2 = vmul.f32 1.442695, %v215_v62 }
 0x3ce   :  { %v225_v3 = vpop.permute.xlu0 %224  ;;  %v338_v10 = vpop.permute.xlu1 %337 }
 0x3cf   :  { %1681 = vpow2.f32 %v329_v63  ;;  %v231_v4 = vsel %vm229_vm4, %v225_v3, 0  ;;  %v343_v49 = vsel %vm229_vm4, %v338_v10, 0 }
 0x3d0   :  { %1683 = vpow2.f32 %v216_v2  ;;  %1505 = vmatpush3.bf16.msra.mxu0 %v231_v4 }
 0x3d1   :  { %1516 = vmatprep.subr.bf16.mxu0 %v1739_v15 }
 0x3dc   :  { %v1963_v5 = vpop.eup %1681 }
 0x3dd   :  { %v1684_v6 = vpop.eup %1683  ;;  %v331_v7 = vsel %vm164_vm2, %v1963_v5, 0.0 }
 0x3de   :  { %332 = vadd.xlane.f32.xlu1 %v331_v7  ;;  %v218_v8 = vsel %vm164_vm2, %v1684_v6, 0.0 }
 0x3df   :  { %219 = vadd.xlane.f32.xlu0 %v218_v8 }
 0x3ef   :  { %687 = vrot.lane.b32.xlu1 %v1869_v42, %s1749_s19 }
 0x3ff   :  { %v438_v9 = vpop.xlane.xlu0 %437  ;;  %v788_v14 = vpop.xlane.xlu1 %787 }
 0x400   :  { %v439_v11 = vsub.f32 %v435_v45, %v438_v9  ;;  %v789_v18 = vsub.f32 %v785_v46, %v788_v14 }
 0x402   :  { %v440_v12 = vmul.f32 1.442695, %v439_v11  ;;  %v790_v22 = vmul.f32 1.442695, %v789_v18 }
 0x403   :  { %v549_v13 = vpop.xlane.xlu0 %548  ;;  %v1010_v34 = vpop.xlane.xlu1 %1009 }
 0x404   :  { %v550_v16 = vsub.f32 %v546_v51, %v549_v13  ;;  %1685 = vpow2.f32 %v440_v12  ;;  %v1011_v35 = vsub.f32 %v1946_v52, %v1010_v34 }
 0x406   :  { %v551_v17 = vmul.f32 1.442695, %v550_v16  ;;  %v1012_v36 = vmul.f32 1.442695, %v1011_v35 }
 0x407   :  { %v677_v19 = vpop.xlane.xlu0 %676 }
 0x408   :  { %v678_v20 = vsub.f32 %v674_v55, %v677_v19  ;;  %1687 = vpow2.f32 %v551_v17 }
 0x40a   :  { %v679_v21 = vmul.f32 1.442695, %v678_v20 }
 0x40b   :  { %v899_v31 = vpop.xlane.xlu0 %898 }
 0x40c   :  { %1689 = vpow2.f32 %v679_v21  ;;  %v900_v32 = vsub.f32 %v896_v57, %v899_v31 }
 0x40d   :  { %1691 = vpow2.f32 %v790_v22 }
 0x40e   :  { %v901_v33 = vmul.f32 1.442695, %v900_v32 }
 0x40f   :  { %v449_v41 = vpop.permute.xlu0 %448 }
 0x410   :  { %1693 = vpow2.f32 %v901_v33  ;;  %v454_v51 = vsel %vm229_vm4, %v449_v41, 0 }
 0x411   :  { %v1686_v23 = vpop.eup %1685  ;;  %1695 = vpow2.f32 %v1012_v36 }
 0x412   :  { %v442_v24 = vsel %vm164_vm2, %v1686_v23, 0.0 }
 0x413   :  { %443 = vadd.xlane.f32.xlu0 %v442_v24 }
 0x415   :  { %v1971_v25 = vpop.eup %1687 }
 0x416   :  { %v553_v26 = vsel %vm164_vm2, %v1971_v25, 0.0 }
 0x417   :  { %554 = vadd.xlane.f32.xlu1 %v553_v26 }
 0x419   :  { %v1975_v27 = vpop.eup %1689 }
 0x41a   :  { %v681_v28 = vsel %vm164_vm2, %v1975_v27, 0.0  ;;  %v1979_v29 = vpop.eup %1691 }
 0x41b   :  { %682 = vadd.xlane.f32.xlu1 %v681_v28  ;;  %v792_v30 = vsel %vm164_vm2, %v1979_v29, 0.0 }
 0x41d   :  { %v1987_v37 = vpop.eup %1693 }
 0x41e   :  { %v903_v39 = vsel %vm164_vm2, %v1987_v37, 0.0  ;;  %v1991_v40 = vpop.eup %1695 }
 0x41f   :  { %793 = vadd.xlane.f32.xlu1 %v792_v30 }
 0x429   :  { %559 = vrot.lane.b32.xlu0 %v1863_v38, %s1751_s21  ;;  %v1014_v38 = vsel %vm164_vm2, %v1991_v40, 0.0 }
 0x430   :  { %798 = vrot.lane.b32.xlu1 %v1869_v42, %s1748_s18 }
 0x448   :  { %904 = vadd.xlane.f32.xlu0 %v903_v39 }
 0x454   :  { %1015 = vadd.xlane.f32.xlu1 %v1014_v38 }
 0x45e   :  { %909 = vrot.lane.b32.xlu0 %v1869_v42, %s1750_s20 }
 0x465   :  { %1020 = vrot.lane.b32.xlu1 %v1869_v42, %s1751_s21 }
 0x467   :  { %v333_v44 = vpop.xlane.xlu1 %332 }
 0x468   :  { %v220_v43 = vpop.xlane.xlu0 %219 }
 0x469   :  { %1697 = vrcp.f32 %v220_v43 }
 0x46a   :  { %1699 = vrcp.f32 %v333_v44 }
 0x46b   :  { %v688_v52 = vpop.permute.xlu1 %687 }
 0x46c   :  { %v693_v4 = vsel %vm229_vm4, %v688_v52, 0 }
 0x476   :  { %v1698_v45 = vpop.eup %1697 }
 0x477   :  { %v222_v46 = vmul.f32 %v1698_v45, %v1684_v6  ;;  %v1700_v48 = vpop.eup %1699 }
 0x478   :  { %v335_v42 = vmul.f32 %v1700_v48, %v1963_v5 }
 0x479   :  { %v223_v47 = vpack.c.bf16 %v222_v46, %v222_v46 }
 0x47a   :  { %v336_v50 = vpack.c.bf16 %v335_v42, %v335_v42 }
 0x47b   :  { %1507 = vmatmul.mubr.msk.bf16.vlgmr.msra.gmra.mxu0 %vm164_vm2, %v223_v47 }
 0x47c   :  { %1517 = vmatpush3.bf16.msra.mxu0 %v343_v49  ;;  %1518 = vmatprep.mubr.msk.bf16.mxu0 %vm1740_vm1, %v1739_v15 }
 0x47d   :  { %1528 = vmatprep.subr.bf16.mxu0 %v1739_v15 }
 0x483   :  { %1519 = vmatmul.mubr.msk.bf16.vlgmr.msra.gmra.mxu0 %vm164_vm2, %v336_v50  ;;  %v1665_v50 = vld [vmem:[%s2136_s4 + $0x8] sm:$0xff]  }
 0x484   :  { %1529 = vmatpush3.bf16.msra.mxu0 %v454_v51  ;;  %1530 = vmatprep.mubr.msk.bf16.mxu0 %vm1740_vm1, %v1739_v15 }
 0x485   :  { %1540 = vmatprep.subr.bf16.mxu0 %v1739_v15  ;;  %1595 = vmatpush3.bf16.msra.mxu1 %v1665_v50 }
 0x486   :  { %1596 = vmatprep.subr.bf16.mxu1 %v1739_v15 }
 0x49c   :  { %v444_v53 = vpop.xlane.xlu0 %443 }
 0x49d   :  { %1701 = vrcp.f32 %v444_v53 }
 0x4a0   :  { %v555_v54 = vpop.xlane.xlu1 %554  ;;  %v560_v58 = vpop.permute.xlu0 %559 }
 0x4a1   :  { %1703 = vrcp.f32 %v555_v54  ;;  %v565_v62 = vsel %vm229_vm4, %v560_v58, 0  ;;  %v1666_v54 = vld [vmem:[%s2136_s4] sm:$0xff]  }
 0x4a2   :  { %1597 = vmatpush3.bf16.msra.mxu1 %v1666_v54 }
 0x4a3   :  { %1610 = vmatprep.subr.bf16.mxu1 %v1739_v15 }
 0x4a4   :  { %v683_v55 = vpop.xlane.xlu1 %682 }
 0x4a5   :  { %1705 = vrcp.f32 %v683_v55 }
 0x4a8   :  { %v794_v61 = vpop.xlane.xlu1 %793 }
 0x4a9   :  { %1707 = vrcp.f32 %v794_v61 }
 0x4aa   :  { %v1702_v56 = vpop.eup %1701 }
 0x4ab   :  { %v446_v57 = vmul.f32 %v1702_v56, %v1686_v23 }
 0x4ac   :  { %v799_v6 = vpop.permute.xlu1 %798 }
 0x4ad   :  { %v447_v59 = vpack.c.bf16 %v446_v57, %v446_v57  ;;  %v804_v9 = vsel %vm229_vm4, %v799_v6, 0 }
 0x4ae   :  { %v1704_v60 = vpop.eup %1703 }
 0x4af   :  { %1531 = vmatmul.mubr.msk.bf16.vlgmr.msra.gmra.mxu0 %vm164_vm2, %v447_v59  ;;  %v557_v63 = vmul.f32 %v1704_v60, %v1971_v25 }
 0x4b0   :  { %1541 = vmatpush3.bf16.msra.mxu0 %v565_v62  ;;  %1542 = vmatprep.mubr.msk.bf16.mxu0 %vm1740_vm1, %v1739_v15 }
 0x4b1   :  { %1552 = vmatprep.subr.bf16.mxu0 %v1739_v15  ;;  %v558_v2 = vpack.c.bf16 %v557_v63, %v557_v63 }
 0x4b2   :  { %v1706_v3 = vpop.eup %1705 }
 0x4b3   :  { %v685_v5 = vmul.f32 %v1706_v3, %v1975_v27 }
 0x4b5   :  { %v686_v7 = vpack.c.bf16 %v685_v5, %v685_v5 }
 0x4b6   :  { %v1708_v8 = vpop.eup %1707 }
 0x4b7   :  { %1543 = vmatmul.mubr.msk.bf16.vlgmr.msra.gmra.mxu0 %vm164_vm2, %v558_v2  ;;  %v796_v10 = vmul.f32 %v1708_v8, %v1979_v29 }
 0x4b8   :  { %1553 = vmatpush3.bf16.msra.mxu0 %v693_v4  ;;  %1554 = vmatprep.mubr.msk.bf16.mxu0 %vm1740_vm1, %v1739_v15 }
 0x4b9   :  { %1564 = vmatprep.subr.bf16.mxu0 %v1739_v15  ;;  %v797_v11 = vpack.c.bf16 %v796_v10, %v796_v10 }
 0x4bf   :  { %1555 = vmatmul.mubr.msk.bf16.vlgmr.msra.gmra.mxu0 %vm164_vm2, %v686_v7 }
 0x4c0   :  { %1565 = vmatpush3.bf16.msra.mxu0 %v804_v9  ;;  %1566 = vmatprep.mubr.msk.bf16.mxu0 %vm1740_vm1, %v1739_v15 }
 0x4c1   :  { %1576 = vmatprep.subr.bf16.mxu0 %v1739_v15 }
 0x4c7   :  { %1567 = vmatmul.mubr.msk.bf16.vlgmr.msra.gmra.mxu0 %vm164_vm2, %v797_v11 }
 0x4c8   :  { %1578 = vmatprep.mubr.msk.bf16.mxu0 %vm1740_vm1, %v1739_v15 }
 0x4d1   :  { %v905_v12 = vpop.xlane.xlu0 %904 }
 0x4d2   :  { %1709 = vrcp.f32 %v905_v12 }
 0x4d5   :  { %v910_v13 = vpop.permute.xlu0 %909 }
 0x4d6   :  { %v915_v14 = vsel %vm229_vm4, %v910_v13, 0 }
 0x4d7   :  { %1577 = vmatpush3.bf16.msra.mxu0 %v915_v14 }
 0x4d8   :  { %1588 = vmatprep.subr.bf16.mxu0 %v1739_v15 }
 0x4dd   :  { %v1016_v16 = vpop.xlane.xlu1 %1015 }
 0x4de   :  { %1711 = vrcp.f32 %v1016_v16 }
 0x4df   :  { %v1710_v17 = vpop.eup %1709 }
 0x4e0   :  { %v907_v18 = vmul.f32 %v1710_v17, %v1987_v37  ;;  %v1421_v17 = vld [vmem:[%s2137_s5] ss:$0 sm:$0xff] }
 0x4e1   :  { %v1021_v19 = vpop.permute.xlu1 %1020 }
 0x4e2   :  { %v1026_v20 = vsel %vm229_vm4, %v1021_v19, 0  ;;  %v908_v21 = vpack.c.bf16 %v907_v18, %v907_v18 }
 0x4e4   :  { %1579 = vmatmul.mubr.msk.bf16.vlgmr.msra.gmra.mxu0 %vm164_vm2, %v908_v21 }
 0x4e5   :  { %1589 = vmatpush3.bf16.msra.mxu0 %v1026_v20  ;;  %1590 = vmatprep.mubr.msk.bf16.mxu0 %vm1740_vm1, %v1739_v15 }
 0x4e6   :  { %1602 = vmatprep.subr.bf16.mxu0 %v1739_v15 }
 0x4eb   :  { %v1712_v22 = vpop.eup %1711 }
 0x4ec   :  { %v1018_v23 = vmul.f32 %v1712_v22, %v1991_v40 }
 0x4ee   :  { %v1019_v24 = vpack.c.bf16 %v1018_v23, %v1018_v23 }
 0x4f0   :  { %1591 = vmatmul.mubr.msk.bf16.vlgmr.msra.gmra.mxu0 %vm164_vm2, %v1019_v24 }
 0x4f1   :  { %1606 = vmatprep.mubr.msk.bf16.mxu0 %vm1740_vm1, %v1739_v15 }
 0x53b   :  { %v267_v25 = vpop.f32.mrf.mxu0 }
 0x53d   :  { %v1508_v26 = vpop.f32.mrf.mxu0 }
 0x53f   :  { %v270_v27 = vpop.f32.mrf.mxu0 }
 0x541   :  { %v1509_v28 = vpop.f32.mrf.mxu0 }
 0x543   :  { %v379_v29 = vpop.f32.mrf.mxu0 }
 0x545   :  { %v1520_v30 = vpop.f32.mrf.mxu0 }
 0x547   :  { %v382_v31 = vpop.f32.mrf.mxu0 }
 0x549   :  { %v1521_v32 = vpop.f32.mrf.mxu0 }
 0x56f   :  { %v490_v33 = vpop.f32.mrf.mxu0 }
 0x571   :  { %v1532_v34 = vpop.f32.mrf.mxu0 }
 0x573   :  { %v493_v35 = vpop.f32.mrf.mxu0 }
 0x575   :  { %v1533_v36 = vpop.f32.mrf.mxu0 }
 0x576   :  { %v1667_v36 = vld [vmem:[%s2140_s8 + $0x8] sm:$0xff]  }
 0x577   :  { %v601_v37 = vpop.f32.mrf.mxu0  ;;  %1603 = vmatpush3.bf16.msra.mxu0 %v1667_v36 }
 0x578   :  { %1604 = vmatprep.subr.bf16.mxu0 %v1739_v15 }
 0x579   :  { %v1544_v39 = vpop.f32.mrf.mxu0 }
 0x57a   :  { %v1669_v39 = vld [vmem:[%s2142_s10 + $0x38] sm:$0xff]  }
 0x57b   :  { %v604_v40 = vpop.f32.mrf.mxu0 }
 0x57c   :  { %v1670_v40 = vld [vmem:[%s2142_s10 + $0x30] sm:$0xff]  }
 0x57d   :  { %v1545_v38 = vpop.f32.mrf.mxu0 }
 0x57e   :  { %v1671_v38 = vld [vmem:[%s2142_s10 + $0x28] sm:$0xff]  }
 0x57f   :  { %v729_v41 = vpop.f32.mrf.mxu0 }
 0x581   :  { %v1556_v43 = vpop.f32.mrf.mxu0 }
 0x582   :  { %v1673_v43 = vld [vmem:[%s2142_s10 + $0x18] sm:$0xff]  }
 0x583   :  { %v732_v44 = vpop.f32.mrf.mxu0 }
 0x585   :  { %v1557_v45 = vpop.f32.mrf.mxu0 }
 0x587   :  { %v840_v46 = vpop.f32.mrf.mxu0 }
 0x588   :  { %v1648_v47 = vpack.i.bf16 %v840_v46, %v379_v29 }
 0x589   :  { %v1568_v48 = vpop.f32.mrf.mxu0 }
 0x58a   :  { %1649 = vrot.lane.b32.xlu0 %v1648_v47, %s1752_s22 }
 0x58b   :  { %v843_v49 = vpop.f32.mrf.mxu0 }
 0x58d   :  { %v1569_v42 = vpop.f32.mrf.mxu0 }
 0x5a4   :  { %v951_v51 = vpop.f32.mrf.mxu0 }
 0x5a5   :  { %v1653_v52 = vpack.i.bf16 %v951_v51, %v490_v33  ;;  %v1425_v51 = vld [vmem:[%s2138_s6] ss:$0 sm:$0xff] }
 0x5a6   :  { %v1580_v53 = vpop.f32.mrf.mxu0 }
 0x5a7   :  { %1654 = vrot.lane.b32.xlu1 %v1653_v52, %s1753_s0 }
 0x5a8   :  { %v954_v55 = vpop.f32.mrf.mxu0 }
 0x5a9   :  { %v1426_v55 = vld [vmem:[%s2139_s7] ss:$0 sm:$0xff] }
 0x5aa   :  { %v1581_v56 = vpop.f32.mrf.mxu0 }
 0x5b0   :  { %v1062_v57 = vpop.f32.mrf.mxu0 }
 0x5b1   :  { %v1658_v58 = vpack.i.bf16 %v1062_v57, %v601_v37  ;;  %v1668_v37 = vld [vmem:[%s2140_s8] sm:$0xff]  }
 0x5b2   :  { %v1592_v59 = vpop.f32.mrf.mxu0  ;;  %1605 = vmatpush3.bf16.msra.mxu0 %v1668_v37 }
 0x5b3   :  { %1659 = vrot.lane.b32.xlu0 %v1658_v58, %s1754_s27 }
 0x5b4   :  { %v1065_v60 = vpop.f32.mrf.mxu0 }
 0x5b5   :  { %v1674_v60 = vld [vmem:[%s2142_s10 + $0x10] sm:$0xff]  }
 0x5b6   :  { %v1593_v61 = vpop.f32.mrf.mxu0 }
 0x5b7   :  { %v1675_v61 = vld [vmem:[%s2142_s10 + $0x8] sm:$0xff]  }
 0x5fc   :  { %v1650_v62 = vpop.permute.xlu0 %1649 }
 0x5fd   :  { %v1652_v2 = vunpack.i.h.bf16 %v1650_v62  ;;  %v1651_v3 = vunpack.i.l.bf16 %v1650_v62  ;;  %v1676_v62 = vld [vmem:[%s2142_s10] sm:$0xff]  }
 0x5ff   :  { %v1080_v7 = vsel %vm164_vm2, %v729_v41, %v1652_v2  ;;  %v619_v8 = vsel %vm164_vm2, %v267_v25, %v1651_v3  ;;  %v1672_v41 = vld [vmem:[%s2142_s10 + $0x20] sm:$0xff]  }
 0x619   :  { %v1655_v63 = vpop.permute.xlu1 %1654 }
 0x61a   :  { %v1657_v4 = vunpack.i.h.bf16 %v1655_v63  ;;  %v1656_v5 = vunpack.i.l.bf16 %v1655_v63  ;;  %v1427_v63 = vld [vmem:[%s2141_s9] ss:$0 sm:$0xff]  ;;  %s1755_s9 = smov [#allocation2]  }
 0x61b   :  { %s1389_s10 = sshll.u32 %s1755_s9, 4  ;;  %s1390_s10 = int_to_ptr.vmem [resolvable:$true] %s1389_s10 }
 0x61c   :  { %v1081_v11 = vsel %vm620_vm5, %v1080_v7, %v1657_v4  ;;  %v621_v12 = vsel %vm620_vm5, %v619_v8, %v1656_v5  ;;  %s1717_s29 = scalar_lea.vmem %s1390_s10, 256  ;;  %p1722_p1 = scmp.lt.s32.totalorder %s1390_s10, %s1390_s10 }
 0x61d   :  { %p1718_p0 = scmp.ne.s32.totalorder %s1390_s10, %s1717_s29  ;;  %p1723_p2 = scmp.lt.s32.totalorder %s1717_s29, %s1717_s29 }
 0x61f   :  { %p1724_p3 = por %p1723_p2, %p1722_p1 }
 0x621   :  { %p1725_p4 = pnand %p1724_p3, %p1718_p0 }
 0x625   :  { %v1660_v6 = vpop.permute.xlu0 %1659 }
 0x626   :  { %v1662_v9 = vunpack.i.h.bf16 %v1660_v6  ;;  %v1661_v10 = vunpack.i.l.bf16 %v1660_v6 }
 0x628   :  { %v1082_v13 = vsel %vm622_vm6, %v1081_v11, %v1662_v9  ;;  %v623_v14 = vsel %vm622_vm6, %v621_v12, %v1661_v10 }
 0x629   :  { %v1083_v16 = vpack.c.bf16 %v1082_v13, %v623_v14 }
 0x62b   :  { %1599 = vmatmul.mubr.msk.bf16.vlgmr.msra.gmra.mxu1 %vm47_vm0, %v1083_v16 }
 0x62c   :  { %1626 = vmatprep.mubr.msk.bf16.mxu1 %vm1740_vm1, %v1739_v15  ;;  %1611 = vmatpush3.bf16.msra.mxu1 %v1669_v39 }
 0x62d   :  { %1612 = vmatprep.subr.bf16.mxu1 %v1739_v15 }
 0x630   :  { %1613 = vmatpush3.bf16.msra.mxu1 %v1670_v40 }
 0x631   :  { %1614 = vmatprep.subr.bf16.mxu1 %v1739_v15 }
 0x634   :  { %1615 = vmatpush3.bf16.msra.mxu1 %v1671_v38 }
 0x635   :  { %1616 = vmatprep.subr.bf16.mxu1 %v1739_v15 }
 0x638   :  { %1617 = vmatpush3.bf16.msra.mxu1 %v1672_v41 }
 0x639   :  { %1618 = vmatprep.subr.bf16.mxu1 %v1739_v15 }
 0x63c   :  { %1619 = vmatpush3.bf16.msra.mxu1 %v1673_v43 }
 0x63d   :  { %1620 = vmatprep.subr.bf16.mxu1 %v1739_v15 }
 0x640   :  { %1621 = vmatpush3.bf16.msra.mxu1 %v1674_v60 }
 0x641   :  { %1622 = vmatprep.subr.bf16.mxu1 %v1739_v15 }
 0x644   :  { %1623 = vmatpush3.bf16.msra.mxu1 %v1675_v61 }
 0x645   :  { %1624 = vmatprep.subr.bf16.mxu1 %v1739_v15  ;;  %v1431_v15 = vld [vmem:[%s2143_s11] ss:$0 sm:$0xff] }
 0x648   :  { %1625 = vmatpush3.bf16.msra.mxu1 %v1676_v62 }
 0x6eb   :  { %v1144_v18 = vpop.f32.mrf.mxu1 }
 0x6ec   :  { %v1145_v19 = vadd.f32 %v1421_v17, %v1144_v18 }
 0x6ed   :  { %v1600_v20 = vpop.f32.mrf.mxu1 }
 0x6ee   :  { %v2060_v21 = vadd.f32 %v1145_v19, %v1825_v0 }
 0x6ef   :  { %v1147_v22 = vpop.f32.mrf.mxu1 }
 0x6f0   :  { %v1148_v23 = vadd.f32 %v1421_v17, %v1147_v22  ;;  %v1155_v24 = vsel %vm47_vm0, %v2060_v21, 0.0 }
 0x6f1   :  { %1156 = vadd.xlane.f32.xlu1 %v1155_v24  ;;  %v1601_v25 = vpop.f32.mrf.mxu1 }
 0x6f2   :  { %v2065_v26 = vadd.f32 %v1148_v23, %v1830_v1 }
 0x6f4   :  { %v1158_v27 = vsel %vm47_vm0, %v2065_v26, 0.0 }
 0x6f5   :  { %1159 = vadd.xlane.f32.xlu0 %v1158_v27 }
 0x77a   :  { %v1157_v28 = vpop.xlane.xlu1 %1156 }
 0x77b   :  { %v1161_v29 = vmul.f32 0.03125, %v1157_v28 }
 0x77d   :  { %v1163_v30 = vsub.f32 %v2060_v21, %v1161_v29 }
 0x77e   :  { %v1160_v0 = vpop.xlane.xlu0 %1159 }
 0x77f   :  { %v1162_v31 = vmul.f32 0.03125, %v1160_v0  ;;  %v1165_v32 = vmul.f32 %v1163_v30, %v1163_v30 }
 0x781   :  { %v1164_v33 = vsub.f32 %v2065_v26, %v1162_v31  ;;  %v1167_v34 = vsel %vm47_vm0, %v1165_v32, 0.0 }
 0x782   :  { %1168 = vadd.xlane.f32.xlu0 %v1167_v34 }
 0x783   :  { %v1166_v35 = vmul.f32 %v1164_v33, %v1164_v33 }
 0x785   :  { %v1170_v1 = vsel %vm47_vm0, %v1166_v35, 0.0 }
 0x786   :  { %1171 = vadd.xlane.f32.xlu0 %v1170_v1 }
 0x80b   :  { %v1169_v44 = vpop.xlane.xlu0 %1168 }
 0x80c   :  { %v1173_v45 = vmul.f32 0.03125, %v1169_v44 }
 0x80e   :  { %v1175_v46 = vadd.f32 1e-05, %v1173_v45 }
 0x80f   :  { %v1172_v47 = vpop.xlane.xlu0 %1171 }
 0x810   :  { %1713 = vrsqrt.f32 %v1175_v46  ;;  %v1174_v48 = vmul.f32 0.03125, %v1172_v47 }
 0x812   :  { %v1176_v49 = vadd.f32 1e-05, %v1174_v48 }
 0x814   :  { %1715 = vrsqrt.f32 %v1176_v49 }
 0x81d   :  { %v1714_v42 = vpop.eup %1713 }
 0x81e   :  { %v1179_v50 = vmul.f32 %v1714_v42, %v1163_v30 }
 0x820   :  { %v1187_v54 = vmul.f32 %v1425_v51, %v1179_v50 }
 0x821   :  { %v1716_v52 = vpop.eup %1715 }
 0x822   :  { %v1180_v53 = vmul.f32 %v1716_v52, %v1164_v33  ;;  %v1195_v57 = vadd.f32 %v1426_v55, %v1187_v54 }
 0x824   :  { %v1188_v56 = vmul.f32 %v1425_v51, %v1180_v53 }
 0x826   :  { %v1196_v58 = vadd.f32 %v1426_v55, %v1188_v56 }
 0x828   :  { %v1197_v59 = vpack.c.bf16 %v1196_v58, %v1195_v57 }
 0x82a   :  { %1607 = vmatmul.mubr.msk.bf16.vlgmr.msra.gmra.mxu0 %vm47_vm0, %v1197_v59 }
 0x8ea   :  { %v1258_v2 = vpop.f32.mrf.mxu0 }
 0x8eb   :  { %v1259_v4 = vadd.f32 %v1427_v63, %v1258_v2 }
 0x8ec   :  { %v1608_v3 = vpop.f32.mrf.mxu0 }
 0x8ed   :  { %v1265_v8 = vmax.f32 %v1259_v4, 0.0 }
 0x8ee   :  { %v1261_v5 = vpop.f32.mrf.mxu0 }
 0x8ef   :  { %v1262_v6 = vadd.f32 %v1427_v63, %v1261_v5 }
 0x8f0   :  { %v1609_v7 = vpop.f32.mrf.mxu0 }
 0x8f1   :  { %v1266_v9 = vmax.f32 %v1262_v6, 0.0 }
 0x8f3   :  { %v1267_v10 = vpack.c.bf16 %v1266_v9, %v1265_v8 }
 0x8f5   :  { %1627 = vmatmul.mubr.bf16.vlgmr.msra.gmra.mxu1 %v1267_v10 }
 0x9b5   :  { %v1373_v11 = vpop.f32.mrf.mxu1 }
 0x9b6   :  { %v1374_v12 = vadd.f32 %v1431_v15, %v1373_v11 }
 0x9b7   :  { %v1628_v13 = vpop.f32.mrf.mxu1 }
 0x9b8   :  { %v1380_v14 = vadd.f32 %v1374_v12, %v2060_v21 }
 0x9b9   :  { %v1376_v16 = vpop.f32.mrf.mxu1 }
 0x9ba   :  { %1382 = vst.msk [vmem:[#allocation2] sm:$0xff] %vm47_vm0, %v1380_v14  ;;  %v1377_v17 = vadd.f32 %v1431_v15, %v1376_v16 }
 0x9bb   :  { %v1629_v18 = vpop.f32.mrf.mxu1 }
 0x9bc   :  { %v1381_v19 = vadd.f32 %v1377_v17, %v2065_v26 }
 0x9be   :  { %1383 = vst.msk [vmem:[#allocation2 + $0x8] sm:$0xff] %vm47_vm0, %v1381_v19 }
 0x9bf   :  { %1728 = shalt.err (!%p1725_p4)
}
 0x9c0   :  { %s1756_s11 = smov 128  }
 0x9c1   :  { %1395 = dma.vmem_to_hbm [thread:$0]  %s1390_s10, 256, %s2144_s12, [#allocation3], %s1756_s11, %s1756_s11, %s1752_s22  }
 0x9c2   :  { %1737 = dma.done.wait [#allocation3], 256  }
 0x9c3   :  { %1738 = vsyncadd [#allocation3], 4294967040 }
 0x9c4   :  { %1399 = vsyncpa [#allocation3], 1 }

</bundles_post_ra>
